<compile_context>
chip_gen: v6e
topology: v6e:2x2x1
jax: 0.10.0
libtpu: 0.0.40
codegen_flags: <defaults>
</compile_context>

<pallas_src>
import functools

import jax
import jax.numpy as jnp
from jax.experimental import pallas as pl
from jax.experimental.pallas import tpu as pltpu

_MIB = 1024 * 1024


def _mha_kernel(x_ref, wq_ref, wk_ref, wv_ref, bq_ref, bk_ref, bv_ref,
                wp_ref, bp_ref, o_ref, k_scr, v_scr, *, num_heads, recompute_kv):
    """One (batch, query-tile) grid step.

    x_ref  : (1, S, E)   full sequence for this batch element (K/V source and
                         query source; the query tile is sliced in-kernel)
    wq/wk/wv_ref : (E, E)   per-projection weights (wq pre-scaled by 1/sqrt(hd))
    bq/bk/bv_ref : (1, E)   biases (bq pre-scaled)
    wp_ref : (E, E), bp_ref : (1, E)   output projection
    o_ref  : (1, tq, E)
    k_scr  : (H, hd, S)  VMEM scratch, K pre-transposed (lane-dense over S)
    v_scr  : (H, S, hd)  VMEM scratch
    """
    S = x_ref.shape[1]
    E = x_ref.shape[2]
    tq = o_ref.shape[1]
    H = num_heads
    hd = E // H

    def _project_kv():
        x = x_ref[0]                                               # (S, E), native dtype
        k = (jnp.dot(x, wk_ref[...], preferred_element_type=jnp.float32)
             + bk_ref[0].astype(jnp.float32)).astype(k_scr.dtype)
        v = (jnp.dot(x, wv_ref[...], preferred_element_type=jnp.float32)
             + bv_ref[0].astype(jnp.float32)).astype(v_scr.dtype)
        # Split heads once; K pre-transposed to (H, hd, S) so per-tile score
        # matmuls need no transpose and the scratch is lane-dense along S.
        k_scr[...] = jnp.transpose(k.reshape(S, H, hd), (1, 2, 0))
        v_scr[...] = jnp.transpose(v.reshape(S, H, hd), (1, 0, 2))

    if recompute_kv:
        # Query-tile axis is "parallel" (megacore with B == 1): each tile
        # re-projects K/V so no cross-tile scratch dependency exists.
        _project_kv()
    else:
        # Project K/V once per batch element; scratch resident across tiles.
        pl.when(pl.program_id(1) == 0)(_project_kv)

    # ---- Q projection for this query tile (scale folded into wq/bq). --------
    q_start = pl.multiple_of(pl.program_id(1) * tq, tq)
    xq = x_ref[:, pl.ds(q_start, tq), :][0]                        # (tq, E)
    q = (jnp.dot(xq, wq_ref[...], preferred_element_type=jnp.float32)
         + bq_ref[0].astype(jnp.float32)).astype(xq.dtype)
    q = jnp.transpose(q.reshape(tq, H, hd), (1, 0, 2))             # (H, tq, hd)

    # ---- Scaled dot-product attention, heads batched on the MXU. ------------
    s = jnp.einsum('hqd,hds->hqs', q, k_scr[...],
                   preferred_element_type=jnp.float32)             # (H, tq, S) f32
    m = jnp.max(s, axis=-1, keepdims=True)
    p = jnp.exp(s - m)                      # f32 exp (v5e EUP has no bf16 path)
    denom = jnp.sum(p, axis=-1, keepdims=True)
    p = (p * pl.reciprocal(denom, approx=True)).astype(v_scr.dtype)
    # attn_dropout(p=0.0) -> identity (eval semantics)

    o = jnp.einsum('hqs,hsd->hqd', p, v_scr[...],
                   preferred_element_type=jnp.float32).astype(xq.dtype)
    o = jnp.transpose(o, (1, 0, 2)).reshape(tq, E)                 # (tq, E) merged heads

    # ---- Output projection (lane-dense (tq, E) store). ----------------------
    out = (jnp.dot(o, wp_ref[...], preferred_element_type=jnp.float32)
           + bp_ref[0].astype(jnp.float32))
    # proj_dropout(p=0.0) -> identity
    o_ref[0] = out.astype(o_ref.dtype)


def _vmem_capacity_bytes():
    try:
        return int(pltpu.get_tpu_info().vmem_capacity_bytes)
    except Exception:
        return 64 * _MIB          # conservative default (v7x per-TensorCore VMEM)


def _pick_query_tile(S, max_tq, align):
    """Largest multiple-of-`align` divisor of S that is <= max_tq (else full S)."""
    if S <= max_tq:
        return S
    start = max_tq - (max_tq % align)
    for t in range(start, align - 1, -align):
        if S % t == 0:
            return t
    # TODO(synk): pad the sequence dim (with key masking in the softmax) for
    # lengths with no aligned divisor instead of falling back to tq = S.
    return S


def multi_head_attention(x, w_qkv, b_qkv, w_proj, b_proj, *, num_heads,
                         max_query_tile=None):
    """x: (B, S, E).  w_qkv: (E, 3E), b_qkv: (3E,), w_proj: (E, E), b_proj: (E,).

    Weights are stored pre-transposed as (in_features, out_features), matching
    PyTorch nn.Linear semantics y = x @ W_pt.T + b.  Eval semantics (dropout=0),
    no attention / key-padding mask.
    """
    B, S, E = x.shape
    assert E % num_heads == 0, "embed_dim must be divisible by num_heads"
    hd = E // num_heads
    dt = x.dtype
    itemsize = jnp.dtype(dt).itemsize
    scale = hd ** (-0.5)

    # Generation-aware sizing: v7x has 64 MiB VMEM / TensorCore, v5e/v6e 128 MiB.
    vmem_cap = _vmem_capacity_bytes()
    small_vmem = vmem_cap <= 64 * _MIB
    if max_query_tile is None:
        max_query_tile = 128 if small_vmem else 256   # bounds live (H, tq, S) f32 scores
    vmem_limit = min(vmem_cap, 42 * _MIB if small_vmem else 100 * _MIB)

    # Split the fused QKV weight and fold the attention scale into W_q / b_q.
    w_q = (w_qkv[:, 0 * E:1 * E] * scale).astype(dt)
    w_k = w_qkv[:, 1 * E:2 * E].astype(dt)
    w_v = w_qkv[:, 2 * E:3 * E].astype(dt)
    b_q = (b_qkv[0 * E:1 * E] * scale).reshape(1, E).astype(dt)
    b_k = b_qkv[1 * E:2 * E].reshape(1, E).astype(dt)
    b_v = b_qkv[2 * E:3 * E].reshape(1, E).astype(dt)
    w_p = w_proj.astype(dt)
    b_p = b_proj.reshape(1, E).astype(dt)

    align = 16 if itemsize == 2 else 8        # bf16 packs 16 rows per sublane tile
    tq = _pick_query_tile(S, max_query_tile, align)
    assert S % tq == 0
    num_q_tiles = S // tq

    # With B == 1 the batch axis cannot feed both v7x TensorCores; make the
    # query-tile axis "parallel" instead by re-projecting K/V on every tile.
    recompute_kv = (B == 1 and num_q_tiles > 1)

    kernel = functools.partial(_mha_kernel, num_heads=num_heads,
                               recompute_kv=recompute_kv)

    cost = pl.CostEstimate(
        flops=int(2 * B * S * E * (3 * E)             # QKV projection
                  + 4 * B * num_heads * S * S * hd    # QK^T and PV
                  + 2 * B * S * E * E),               # output projection
        transcendentals=int(B * num_heads * S * S),
        bytes_accessed=int((B * S * E                 # x (read once)
                            + 4 * E * E + 4 * E       # weights + biases
                            + B * S * E) * itemsize), # output
    )

    def _build(weight_mode):
        def const_spec(shape):
            idx = lambda b, qt: (0,) * len(shape)
            if weight_mode is None:
                return pl.BlockSpec(shape, idx)
            return pl.BlockSpec(shape, idx, pipeline_mode=weight_mode)

        return pl.pallas_call(
            kernel,
            out_shape=jax.ShapeDtypeStruct((B, S, E), dt),
            grid_spec=pltpu.PrefetchScalarGridSpec(
                num_scalar_prefetch=0,
                grid=(B, num_q_tiles),
                in_specs=[
                    pl.BlockSpec((1, S, E), lambda b, qt: (b, 0, 0)),  # x (K/V + queries)
                    const_spec((E, E)),   # W_q (scaled)
                    const_spec((E, E)),   # W_k
                    const_spec((E, E)),   # W_v
                    const_spec((1, E)),   # b_q (scaled)
                    const_spec((1, E)),   # b_k
                    const_spec((1, E)),   # b_v
                    const_spec((E, E)),   # W_proj
                    const_spec((1, E)),   # b_proj
                ],
                out_specs=pl.BlockSpec((1, tq, E), lambda b, qt: (b, qt, 0)),
                scratch_shapes=[
                    pltpu.VMEM((num_heads, hd, S), dt),   # K, pre-transposed per head
                    pltpu.VMEM((num_heads, S, hd), dt),   # V, per head
                ],
            ),
            compiler_params=pltpu.CompilerParams(
                dimension_semantics=(
                    "parallel", "parallel" if recompute_kv else "arbitrary"),
                vmem_limit_bytes=int(vmem_limit),
            ),
            cost_estimate=cost,
        )

    args = (x, w_q, w_k, w_v, b_q, b_k, b_v, w_p, b_p)

    # Constant-index weights/biases never change across the grid; single-buffer
    # them to free VMEM (biggest win under v7x's 64 MiB/TC).  Fall back to the
    # default pipeline mode if this JAX build rejects Buffered(1).
    buffered = getattr(pl, "Buffered", None)
    modes = (buffered(1), None) if buffered is not None else (None,)
    last_err = None
    for mode in modes:
        try:
            return jax.block_until_ready(_build(mode)(*args))
        except Exception as e:     # pragma: no cover - version-dependent support
            last_err = e
    raise last_err


def _reference(x, w_qkv, b_qkv, w_proj, b_proj, num_heads):
    """Pure-JAX reference mirroring the PyTorch forward (fp32)."""
    B, S, E = x.shape
    hd = E // num_heads
    qkv = x @ w_qkv + b_qkv                                      # (B, S, 3E)
    qkv = qkv.reshape(B, S, 3, num_heads, hd)
    qkv = jnp.transpose(qkv, (2, 0, 3, 1, 4))                    # (3, B, H, S, hd)
    q, k, v = qkv[0], qkv[1], qkv[2]
    attn = jnp.einsum("bhqd,bhkd->bhqk", q, k) * hd ** (-0.5)
    attn = jax.nn.softmax(attn, axis=-1)
    out = jnp.einsum("bhqk,bhkd->bhqd", attn, v)
    out = jnp.transpose(out, (0, 2, 1, 3)).reshape(B, S, E)
    return out @ w_proj + b_proj


if __name__ == "__main__":
    # Small shapes consistent with the module: batch=2, seq=8, embed=32, 4 heads.
    B, S, E, H = 2, 8, 32, 4

    key = jax.random.PRNGKey(0)
    kx, k1, k2, k3, k4 = jax.random.split(key, 5)

    x = jax.random.normal(kx, (B, S, E), dtype=jnp.float32)
    w_qkv = jax.random.normal(k1, (E, 3 * E), dtype=jnp.float32) * 0.02
    b_qkv = jax.random.normal(k2, (3 * E,), dtype=jnp.float32) * 0.02
    w_proj = jax.random.normal(k3, (E, E), dtype=jnp.float32) * 0.02
    b_proj = jax.random.normal(k4, (E,), dtype=jnp.float32) * 0.02

    ref = _reference(x, w_qkv, b_qkv, w_proj, b_proj, H)

    # fp32 path (tight-ish tolerance; approx reciprocal adds ~1e-4-level noise).
    out_f32 = multi_head_attention(x, w_qkv, b_qkv, w_proj, b_proj, num_heads=H)
    out_f32 = jax.block_until_ready(out_f32)
    assert out_f32.shape == (B, S, E)
    assert jnp.allclose(out_f32, ref, atol=1e-3, rtol=1e-3)

    # bf16 path (full-rate MXU: bf16 operands, f32 accumulation); loose tolerance.
    out_bf16 = multi_head_attention(x.astype(jnp.bfloat16), w_qkv, b_qkv,
                                    w_proj, b_proj, num_heads=H)
    out_bf16 = jax.block_until_ready(out_bf16)
    assert out_bf16.shape == (B, S, E)
    assert bool(jnp.all(jnp.isfinite(out_bf16.astype(jnp.float32))))
    assert jnp.allclose(out_bf16.astype(jnp.float32), ref, atol=2e-2, rtol=5e-2)

    print("KERNEL_OK")
</pallas_src>

<mosaic_0001>
module attributes {stable_mosaic.version = 11 : i64} {
  func.func @_mha_kernel(%arg0: i32, %arg1: i32, %arg2: memref<1x8x32xf32, #tpu.memory_space<vmem>>, %arg3: memref<32x32xf32, #tpu.memory_space<vmem>>, %arg4: memref<32x32xf32, #tpu.memory_space<vmem>>, %arg5: memref<32x32xf32, #tpu.memory_space<vmem>>, %arg6: memref<1x32xf32, #tpu.memory_space<vmem>>, %arg7: memref<1x32xf32, #tpu.memory_space<vmem>>, %arg8: memref<1x32xf32, #tpu.memory_space<vmem>>, %arg9: memref<32x32xf32, #tpu.memory_space<vmem>>, %arg10: memref<1x32xf32, #tpu.memory_space<vmem>>, %arg11: memref<1x8x32xf32, #tpu.memory_space<vmem>>, %arg12: memref<4x8x8xf32, #tpu.memory_space<vmem>>, %arg13: memref<4x8x8xf32, #tpu.memory_space<vmem>>) attributes {dimension_semantics = [#tpu.dimension_semantics<parallel>, #tpu.dimension_semantics<arbitrary>], iteration_bounds = array<i64: 2, 1>, scalar_prefetch = 0 : i64, scratch_operands = 2 : i64, tpu.core_type = #tpu.core_type<tc>, window_params = [{transform_indices = @transform_0, window_bounds = array<i64: 1, 8, 32>}, {pipeline_mode = #tpu.pipeline_mode<synchronous>, transform_indices = @transform_1, window_bounds = array<i64: 32, 32>}, {pipeline_mode = #tpu.pipeline_mode<synchronous>, transform_indices = @transform_2, window_bounds = array<i64: 32, 32>}, {pipeline_mode = #tpu.pipeline_mode<synchronous>, transform_indices = @transform_3, window_bounds = array<i64: 32, 32>}, {pipeline_mode = #tpu.pipeline_mode<synchronous>, transform_indices = @transform_4, window_bounds = array<i64: 1, 32>}, {pipeline_mode = #tpu.pipeline_mode<synchronous>, transform_indices = @transform_5, window_bounds = array<i64: 1, 32>}, {pipeline_mode = #tpu.pipeline_mode<synchronous>, transform_indices = @transform_6, window_bounds = array<i64: 1, 32>}, {pipeline_mode = #tpu.pipeline_mode<synchronous>, transform_indices = @transform_7, window_bounds = array<i64: 32, 32>}, {pipeline_mode = #tpu.pipeline_mode<synchronous>, transform_indices = @transform_8, window_bounds = array<i64: 1, 32>}, {transform_indices = @transform_9, window_bounds = array<i64: 1, 8, 32>}]} {
    %c0_i32 = arith.constant 0 : i32
    %0 = arith.cmpi eq, %arg1, %c0_i32 : i32
    %1 = arith.extui %0 : i1 to i32
    %c0_i32_0 = arith.constant 0 : i32
    %2 = arith.cmpi ne, %1, %c0_i32_0 : i32
    scf.if %2 {
      %c0_24 = arith.constant 0 : index
      %c0_25 = arith.constant 0 : index
      %c0_26 = arith.constant 0 : index
      %43 = vector.load %arg2[%c0_24, %c0_25, %c0_26] : memref<1x8x32xf32, #tpu.memory_space<vmem>>, vector<1x8x32xf32>
      %44 = vector.shape_cast %43 : vector<1x8x32xf32> to vector<8x32xf32>
      %c0_27 = arith.constant 0 : index
      %c0_28 = arith.constant 0 : index
      %45 = vector.load %arg4[%c0_27, %c0_28] : memref<32x32xf32, #tpu.memory_space<vmem>>, vector<32x32xf32>
      %cst_29 = arith.constant dense<0.000000e+00> : vector<8x32xf32>
      %46 = tpu.matmul %44, %45, %cst_29 {dimension_numbers = #tpu.dot_dimension_numbers<[1], [0], [0], [1], [0, 0, 1, 1], [], []>} : vector<8x32xf32>, vector<32x32xf32>, vector<8x32xf32> -> vector<8x32xf32>
      %c0_30 = arith.constant 0 : index
      %c0_31 = arith.constant 0 : index
      %47 = vector.load %arg7[%c0_30, %c0_31] : memref<1x32xf32, #tpu.memory_space<vmem>>, vector<1x32xf32>
      %48 = vector.shape_cast %47 : vector<1x32xf32> to vector<32xf32>
      %49 = vector.shape_cast %48 : vector<32xf32> to vector<1x32xf32>
      %50 = vector.broadcast %49 : vector<1x32xf32> to vector<8x32xf32>
      %51 = arith.addf %46, %50 : vector<8x32xf32>
      %c0_32 = arith.constant 0 : index
      %c0_33 = arith.constant 0 : index
      %52 = vector.load %arg5[%c0_32, %c0_33] : memref<32x32xf32, #tpu.memory_space<vmem>>, vector<32x32xf32>
      %cst_34 = arith.constant dense<0.000000e+00> : vector<8x32xf32>
      %53 = tpu.matmul %44, %52, %cst_34 {dimension_numbers = #tpu.dot_dimension_numbers<[1], [0], [0], [1], [0, 0, 1, 1], [], []>} : vector<8x32xf32>, vector<32x32xf32>, vector<8x32xf32> -> vector<8x32xf32>
      %c0_35 = arith.constant 0 : index
      %c0_36 = arith.constant 0 : index
      %54 = vector.load %arg8[%c0_35, %c0_36] : memref<1x32xf32, #tpu.memory_space<vmem>>, vector<1x32xf32>
      %55 = vector.shape_cast %54 : vector<1x32xf32> to vector<32xf32>
      %56 = vector.shape_cast %55 : vector<32xf32> to vector<1x32xf32>
      %57 = vector.broadcast %56 : vector<1x32xf32> to vector<8x32xf32>
      %58 = arith.addf %53, %57 : vector<8x32xf32>
      %59 = vector.shape_cast %51 : vector<8x32xf32> to vector<8x4x8xf32>
      %60 = tpu.transpose %59, [1, 2, 0] : vector<8x4x8xf32> -> vector<4x8x8xf32>
      %c0_37 = arith.constant 0 : index
      %c0_38 = arith.constant 0 : index
      %c0_39 = arith.constant 0 : index
      %61 = vector.load %arg12[%c0_37, %c0_38, %c0_39] : memref<4x8x8xf32, #tpu.memory_space<vmem>>, vector<4x8x8xf32>
      tpu.vector_store %arg12[%c0_37, %c0_38, %c0_39], %60 {strides = array<i32>} : memref<4x8x8xf32, #tpu.memory_space<vmem>>, vector<4x8x8xf32>,
      %62 = vector.shape_cast %58 : vector<8x32xf32> to vector<8x4x8xf32>
      %63 = tpu.transpose %62, [1, 0, 2] : vector<8x4x8xf32> -> vector<4x8x8xf32>
      %c0_40 = arith.constant 0 : index
      %c0_41 = arith.constant 0 : index
      %c0_42 = arith.constant 0 : index
      %64 = vector.load %arg13[%c0_40, %c0_41, %c0_42] : memref<4x8x8xf32, #tpu.memory_space<vmem>>, vector<4x8x8xf32>
      tpu.vector_store %arg13[%c0_40, %c0_41, %c0_42], %63 {strides = array<i32>} : memref<4x8x8xf32, #tpu.memory_space<vmem>>, vector<4x8x8xf32>,
    } else {
    }
    %c8_i32 = arith.constant 8 : i32
    %3 = arith.muli %arg1, %c8_i32 : i32
    %4 = tpu.assume_multiple %3, 8 : i32
    %c0 = arith.constant 0 : index
    %5 = arith.index_cast %4 : i32 to index
    %c0_1 = arith.constant 0 : index
    %6 = vector.load %arg2[%c0, %5, %c0_1] : memref<1x8x32xf32, #tpu.memory_space<vmem>>, vector<1x8x32xf32>
    %7 = vector.shape_cast %6 : vector<1x8x32xf32> to vector<8x32xf32>
    %c0_2 = arith.constant 0 : index
    %c0_3 = arith.constant 0 : index
    %8 = vector.load %arg3[%c0_2, %c0_3] : memref<32x32xf32, #tpu.memory_space<vmem>>, vector<32x32xf32>
    %cst = arith.constant dense<0.000000e+00> : vector<8x32xf32>
    %9 = tpu.matmul %7, %8, %cst {dimension_numbers = #tpu.dot_dimension_numbers<[1], [0], [0], [1], [0, 0, 1, 1], [], []>} : vector<8x32xf32>, vector<32x32xf32>, vector<8x32xf32> -> vector<8x32xf32>
    %c0_4 = arith.constant 0 : index
    %c0_5 = arith.constant 0 : index
    %10 = vector.load %arg6[%c0_4, %c0_5] : memref<1x32xf32, #tpu.memory_space<vmem>>, vector<1x32xf32>
    %11 = vector.shape_cast %10 : vector<1x32xf32> to vector<32xf32>
    %12 = vector.shape_cast %11 : vector<32xf32> to vector<1x32xf32>
    %13 = vector.broadcast %12 : vector<1x32xf32> to vector<8x32xf32>
    %14 = arith.addf %9, %13 : vector<8x32xf32>
    %15 = vector.shape_cast %14 : vector<8x32xf32> to vector<8x4x8xf32>
    %16 = tpu.transpose %15, [1, 0, 2] : vector<8x4x8xf32> -> vector<4x8x8xf32>
    %c0_6 = arith.constant 0 : index
    %c0_7 = arith.constant 0 : index
    %c0_8 = arith.constant 0 : index
    %17 = vector.load %arg12[%c0_6, %c0_7, %c0_8] : memref<4x8x8xf32, #tpu.memory_space<vmem>>, vector<4x8x8xf32>
    "tpu.trace_start"() <{level = 10 : i32, message = "hqd,hds->hqs"}> : () -> ()
    %cst_9 = arith.constant dense<0.000000e+00> : vector<4x8x8xf32>
    %18 = tpu.matmul %16, %17, %cst_9 {dimension_numbers = #tpu.dot_dimension_numbers<[2], [1], [1], [2], [0, 0, 0, 1, 1, 2], [0], [0]>} : vector<4x8x8xf32>, vector<4x8x8xf32>, vector<4x8x8xf32> -> vector<4x8x8xf32>
    "tpu.trace_stop"() : () -> ()
    %cst_10 = arith.constant dense<0xFF800000> : vector<4x8xf32>
    %19 = vector.multi_reduction <maximumf>, %18, %cst_10 [2] : vector<4x8x8xf32> to vector<4x8xf32>
    %20 = vector.shape_cast %19 : vector<4x8xf32> to vector<4x8x1xf32>
    %21 = vector.broadcast %20 : vector<4x8x1xf32> to vector<4x8x8xf32>
    %22 = arith.subf %18, %21 : vector<4x8x8xf32>
    %23 = math.exp %22 : vector<4x8x8xf32>
    %cst_11 = arith.constant dense<0.000000e+00> : vector<4x8xf32>
    %24 = vector.multi_reduction <add>, %23, %cst_11 [2] : vector<4x8x8xf32> to vector<4x8xf32>
    %25 = vector.shape_cast %24 : vector<4x8xf32> to vector<4x8x1xf32>
    %26 = tpu.reciprocal %25 {approx = true} : vector<4x8x1xf32> -> vector<4x8x1xf32>
    %27 = vector.broadcast %26 : vector<4x8x1xf32> to vector<4x8x8xf32>
    %28 = arith.mulf %23, %27 : vector<4x8x8xf32>
    %c0_12 = arith.constant 0 : index
    %c0_13 = arith.constant 0 : index
    %c0_14 = arith.constant 0 : index
    %29 = vector.load %arg13[%c0_12, %c0_13, %c0_14] : memref<4x8x8xf32, #tpu.memory_space<vmem>>, vector<4x8x8xf32>
    "tpu.trace_start"() <{level = 10 : i32, message = "hqs,hsd->hqd"}> : () -> ()
    %cst_15 = arith.constant dense<0.000000e+00> : vector<4x8x8xf32>
    %30 = tpu.matmul %28, %29, %cst_15 {dimension_numbers = #tpu.dot_dimension_numbers<[2], [1], [1], [2], [0, 0, 0, 1, 1, 2], [0], [0]>} : vector<4x8x8xf32>, vector<4x8x8xf32>, vector<4x8x8xf32> -> vector<4x8x8xf32>
    "tpu.trace_stop"() : () -> ()
    %31 = tpu.transpose %30, [1, 0, 2] : vector<4x8x8xf32> -> vector<8x4x8xf32>
    %32 = vector.shape_cast %31 : vector<8x4x8xf32> to vector<8x32xf32>
    %c0_16 = arith.constant 0 : index
    %c0_17 = arith.constant 0 : index
    %33 = vector.load %arg9[%c0_16, %c0_17] : memref<32x32xf32, #tpu.memory_space<vmem>>, vector<32x32xf32>
    %cst_18 = arith.constant dense<0.000000e+00> : vector<8x32xf32>
    %34 = tpu.matmul %32, %33, %cst_18 {dimension_numbers = #tpu.dot_dimension_numbers<[1], [0], [0], [1], [0, 0, 1, 1], [], []>} : vector<8x32xf32>, vector<32x32xf32>, vector<8x32xf32> -> vector<8x32xf32>
    %c0_19 = arith.constant 0 : index
    %c0_20 = arith.constant 0 : index
    %35 = vector.load %arg10[%c0_19, %c0_20] : memref<1x32xf32, #tpu.memory_space<vmem>>, vector<1x32xf32>
    %36 = vector.shape_cast %35 : vector<1x32xf32> to vector<32xf32>
    %37 = vector.shape_cast %36 : vector<32xf32> to vector<1x32xf32>
    %38 = vector.broadcast %37 : vector<1x32xf32> to vector<8x32xf32>
    %39 = arith.addf %34, %38 : vector<8x32xf32>
    %c0_21 = arith.constant 0 : index
    %c0_22 = arith.constant 0 : index
    %c0_23 = arith.constant 0 : index
    %40 = vector.load %arg11[%c0_21, %c0_22, %c0_23] : memref<1x8x32xf32, #tpu.memory_space<vmem>>, vector<1x8x32xf32>
    %41 = vector.shape_cast %40 : vector<1x8x32xf32> to vector<8x32xf32>
    %42 = vector.shape_cast %39 : vector<8x32xf32> to vector<1x8x32xf32>
    tpu.vector_store %arg11[%c0_21, %c0_22, %c0_23], %42 {strides = array<i32>} : memref<1x8x32xf32, #tpu.memory_space<vmem>>, vector<1x8x32xf32>,
    return
  }
  func.func @transform_0(%arg0: i32, %arg1: i32) -> (i32, i32, i32) {
    %c0_i32 = arith.constant 0 : i32
    %c0_i32_0 = arith.constant 0 : i32
    %c0_i32_1 = arith.constant 0 : i32
    return %arg0, %c0_i32, %c0_i32_0 : i32, i32, i32
  }
  func.func @transform_1(%arg0: i32, %arg1: i32) -> (i32, i32) {
    %c0_i32 = arith.constant 0 : i32
    %c0_i32_0 = arith.constant 0 : i32
    %c0_i32_1 = arith.constant 0 : i32
    return %c0_i32, %c0_i32_0 : i32, i32
  }
  func.func @transform_2(%arg0: i32, %arg1: i32) -> (i32, i32) {
    %c0_i32 = arith.constant 0 : i32
    %c0_i32_0 = arith.constant 0 : i32
    %c0_i32_1 = arith.constant 0 : i32
    return %c0_i32, %c0_i32_0 : i32, i32
  }
  func.func @transform_3(%arg0: i32, %arg1: i32) -> (i32, i32) {
    %c0_i32 = arith.constant 0 : i32
    %c0_i32_0 = arith.constant 0 : i32
    %c0_i32_1 = arith.constant 0 : i32
    return %c0_i32, %c0_i32_0 : i32, i32
  }
  func.func @transform_4(%arg0: i32, %arg1: i32) -> (i32, i32) {
    %c0_i32 = arith.constant 0 : i32
    %c0_i32_0 = arith.constant 0 : i32
    %c0_i32_1 = arith.constant 0 : i32
    return %c0_i32, %c0_i32_0 : i32, i32
  }
  func.func @transform_5(%arg0: i32, %arg1: i32) -> (i32, i32) {
    %c0_i32 = arith.constant 0 : i32
    %c0_i32_0 = arith.constant 0 : i32
    %c0_i32_1 = arith.constant 0 : i32
    return %c0_i32, %c0_i32_0 : i32, i32
  }
  func.func @transform_6(%arg0: i32, %arg1: i32) -> (i32, i32) {
    %c0_i32 = arith.constant 0 : i32
    %c0_i32_0 = arith.constant 0 : i32
    %c0_i32_1 = arith.constant 0 : i32
    return %c0_i32, %c0_i32_0 : i32, i32
  }
  func.func @transform_7(%arg0: i32, %arg1: i32) -> (i32, i32) {
    %c0_i32 = arith.constant 0 : i32
    %c0_i32_0 = arith.constant 0 : i32
    %c0_i32_1 = arith.constant 0 : i32
    return %c0_i32, %c0_i32_0 : i32, i32
  }
  func.func @transform_8(%arg0: i32, %arg1: i32) -> (i32, i32) {
    %c0_i32 = arith.constant 0 : i32
    %c0_i32_0 = arith.constant 0 : i32
    %c0_i32_1 = arith.constant 0 : i32
    return %c0_i32, %c0_i32_0 : i32, i32
  }
  func.func @transform_9(%arg0: i32, %arg1: i32) -> (i32, i32, i32) {
    %c0_i32 = arith.constant 0 : i32
    %c0_i32_0 = arith.constant 0 : i32
    return %arg0, %arg1, %c0_i32 : i32, i32, i32
  }
}

module attributes {stable_mosaic.version = 11 : i64} {
  func.func @_mha_kernel(%arg0: i32, %arg1: i32, %arg2: memref<1x8x32xf32, #tpu.memory_space<vmem>>, %arg3: memref<32x32xf32, #tpu.memory_space<vmem>>, %arg4: memref<32x32xf32, #tpu.memory_space<vmem>>, %arg5: memref<32x32xf32, #tpu.memory_space<vmem>>, %arg6: memref<1x32xf32, #tpu.memory_space<vmem>>, %arg7: memref<1x32xf32, #tpu.memory_space<vmem>>, %arg8: memref<1x32xf32, #tpu.memory_space<vmem>>, %arg9: memref<32x32xf32, #tpu.memory_space<vmem>>, %arg10: memref<1x32xf32, #tpu.memory_space<vmem>>, %arg11: memref<1x8x32xf32, #tpu.memory_space<vmem>>, %arg12: memref<4x8x8xf32, #tpu.memory_space<vmem>>, %arg13: memref<4x8x8xf32, #tpu.memory_space<vmem>>) attributes {dimension_semantics = [#tpu.dimension_semantics<parallel>, #tpu.dimension_semantics<arbitrary>], iteration_bounds = array<i64: 2, 1>, scalar_prefetch = 0 : i64, scratch_operands = 2 : i64, tpu.core_type = #tpu.core_type<tc>, window_params = [{transform_indices = @transform_0, window_bounds = array<i64: 1, 8, 32>}, {pipeline_mode = #tpu.pipeline_mode<synchronous>, transform_indices = @transform_1, window_bounds = array<i64: 32, 32>}, {pipeline_mode = #tpu.pipeline_mode<synchronous>, transform_indices = @transform_2, window_bounds = array<i64: 32, 32>}, {pipeline_mode = #tpu.pipeline_mode<synchronous>, transform_indices = @transform_3, window_bounds = array<i64: 32, 32>}, {pipeline_mode = #tpu.pipeline_mode<synchronous>, transform_indices = @transform_4, window_bounds = array<i64: 1, 32>}, {pipeline_mode = #tpu.pipeline_mode<synchronous>, transform_indices = @transform_5, window_bounds = array<i64: 1, 32>}, {pipeline_mode = #tpu.pipeline_mode<synchronous>, transform_indices = @transform_6, window_bounds = array<i64: 1, 32>}, {pipeline_mode = #tpu.pipeline_mode<synchronous>, transform_indices = @transform_7, window_bounds = array<i64: 32, 32>}, {pipeline_mode = #tpu.pipeline_mode<synchronous>, transform_indices = @transform_8, window_bounds = array<i64: 1, 32>}, {transform_indices = @transform_9, window_bounds = array<i64: 1, 8, 32>}]} {
    %c0_i32 = arith.constant 0 : i32
    %0 = arith.cmpi eq, %arg1, %c0_i32 : i32
    %1 = arith.extui %0 : i1 to i32
    %c0_i32_0 = arith.constant 0 : i32
    %2 = arith.cmpi ne, %1, %c0_i32_0 : i32
    scf.if %2 {
      %c0_24 = arith.constant 0 : index
      %c0_25 = arith.constant 0 : index
      %c0_26 = arith.constant 0 : index
      %43 = vector.load %arg2[%c0_24, %c0_25, %c0_26] : memref<1x8x32xf32, #tpu.memory_space<vmem>>, vector<1x8x32xf32>
      %44 = vector.shape_cast %43 : vector<1x8x32xf32> to vector<8x32xf32>
      %c0_27 = arith.constant 0 : index
      %c0_28 = arith.constant 0 : index
      %45 = vector.load %arg4[%c0_27, %c0_28] : memref<32x32xf32, #tpu.memory_space<vmem>>, vector<32x32xf32>
      %cst_29 = arith.constant dense<0.000000e+00> : vector<8x32xf32>
      %46 = tpu.matmul %44, %45, %cst_29 {dimension_numbers = #tpu.dot_dimension_numbers<[1], [0], [0], [1], [0, 0, 1, 1], [], []>} : vector<8x32xf32>, vector<32x32xf32>, vector<8x32xf32> -> vector<8x32xf32>
      %c0_30 = arith.constant 0 : index
      %c0_31 = arith.constant 0 : index
      %47 = vector.load %arg7[%c0_30, %c0_31] : memref<1x32xf32, #tpu.memory_space<vmem>>, vector<1x32xf32>
      %48 = vector.shape_cast %47 : vector<1x32xf32> to vector<32xf32>
      %49 = vector.shape_cast %48 : vector<32xf32> to vector<1x32xf32>
      %50 = vector.broadcast %49 : vector<1x32xf32> to vector<8x32xf32>
      %51 = arith.addf %46, %50 : vector<8x32xf32>
      %c0_32 = arith.constant 0 : index
      %c0_33 = arith.constant 0 : index
      %52 = vector.load %arg5[%c0_32, %c0_33] : memref<32x32xf32, #tpu.memory_space<vmem>>, vector<32x32xf32>
      %cst_34 = arith.constant dense<0.000000e+00> : vector<8x32xf32>
      %53 = tpu.matmul %44, %52, %cst_34 {dimension_numbers = #tpu.dot_dimension_numbers<[1], [0], [0], [1], [0, 0, 1, 1], [], []>} : vector<8x32xf32>, vector<32x32xf32>, vector<8x32xf32> -> vector<8x32xf32>
      %c0_35 = arith.constant 0 : index
      %c0_36 = arith.constant 0 : index
      %54 = vector.load %arg8[%c0_35, %c0_36] : memref<1x32xf32, #tpu.memory_space<vmem>>, vector<1x32xf32>
      %55 = vector.shape_cast %54 : vector<1x32xf32> to vector<32xf32>
      %56 = vector.shape_cast %55 : vector<32xf32> to vector<1x32xf32>
      %57 = vector.broadcast %56 : vector<1x32xf32> to vector<8x32xf32>
      %58 = arith.addf %53, %57 : vector<8x32xf32>
      %59 = vector.shape_cast %51 : vector<8x32xf32> to vector<8x4x8xf32>
      %60 = tpu.transpose %59, [1, 2, 0] : vector<8x4x8xf32> -> vector<4x8x8xf32>
      %c0_37 = arith.constant 0 : index
      %c0_38 = arith.constant 0 : index
      %c0_39 = arith.constant 0 : index
      %61 = vector.load %arg12[%c0_37, %c0_38, %c0_39] : memref<4x8x8xf32, #tpu.memory_space<vmem>>, vector<4x8x8xf32>
      tpu.vector_store %arg12[%c0_37, %c0_38, %c0_39], %60 {strides = array<i32>} : memref<4x8x8xf32, #tpu.memory_space<vmem>>, vector<4x8x8xf32>,
      %62 = vector.shape_cast %58 : vector<8x32xf32> to vector<8x4x8xf32>
      %63 = tpu.transpose %62, [1, 0, 2] : vector<8x4x8xf32> -> vector<4x8x8xf32>
      %c0_40 = arith.constant 0 : index
      %c0_41 = arith.constant 0 : index
      %c0_42 = arith.constant 0 : index
      %64 = vector.load %arg13[%c0_40, %c0_41, %c0_42] : memref<4x8x8xf32, #tpu.memory_space<vmem>>, vector<4x8x8xf32>
      tpu.vector_store %arg13[%c0_40, %c0_41, %c0_42], %63 {strides = array<i32>} : memref<4x8x8xf32, #tpu.memory_space<vmem>>, vector<4x8x8xf32>,
    } else {
    }
    %c8_i32 = arith.constant 8 : i32
    %3 = arith.muli %arg1, %c8_i32 : i32
    %4 = tpu.assume_multiple %3, 8 : i32
    %c0 = arith.constant 0 : index
    %5 = arith.index_cast %4 : i32 to index
    %c0_1 = arith.constant 0 : index
    %6 = vector.load %arg2[%c0, %5, %c0_1] : memref<1x8x32xf32, #tpu.memory_space<vmem>>, vector<1x8x32xf32>
    %7 = vector.shape_cast %6 : vector<1x8x32xf32> to vector<8x32xf32>
    %c0_2 = arith.constant 0 : index
    %c0_3 = arith.constant 0 : index
    %8 = vector.load %arg3[%c0_2, %c0_3] : memref<32x32xf32, #tpu.memory_space<vmem>>, vector<32x32xf32>
    %cst = arith.constant dense<0.000000e+00> : vector<8x32xf32>
    %9 = tpu.matmul %7, %8, %cst {dimension_numbers = #tpu.dot_dimension_numbers<[1], [0], [0], [1], [0, 0, 1, 1], [], []>} : vector<8x32xf32>, vector<32x32xf32>, vector<8x32xf32> -> vector<8x32xf32>
    %c0_4 = arith.constant 0 : index
    %c0_5 = arith.constant 0 : index
    %10 = vector.load %arg6[%c0_4, %c0_5] : memref<1x32xf32, #tpu.memory_space<vmem>>, vector<1x32xf32>
    %11 = vector.shape_cast %10 : vector<1x32xf32> to vector<32xf32>
    %12 = vector.shape_cast %11 : vector<32xf32> to vector<1x32xf32>
    %13 = vector.broadcast %12 : vector<1x32xf32> to vector<8x32xf32>
    %14 = arith.addf %9, %13 : vector<8x32xf32>
    %15 = vector.shape_cast %14 : vector<8x32xf32> to vector<8x4x8xf32>
    %16 = tpu.transpose %15, [1, 0, 2] : vector<8x4x8xf32> -> vector<4x8x8xf32>
    %c0_6 = arith.constant 0 : index
    %c0_7 = arith.constant 0 : index
    %c0_8 = arith.constant 0 : index
    %17 = vector.load %arg12[%c0_6, %c0_7, %c0_8] : memref<4x8x8xf32, #tpu.memory_space<vmem>>, vector<4x8x8xf32>
    "tpu.trace_start"() <{level = 10 : i32, message = "hqd,hds->hqs"}> : () -> ()
    %cst_9 = arith.constant dense<0.000000e+00> : vector<4x8x8xf32>
    %18 = tpu.matmul %16, %17, %cst_9 {dimension_numbers = #tpu.dot_dimension_numbers<[2], [1], [1], [2], [0, 0, 0, 1, 1, 2], [0], [0]>} : vector<4x8x8xf32>, vector<4x8x8xf32>, vector<4x8x8xf32> -> vector<4x8x8xf32>
    "tpu.trace_stop"() : () -> ()
    %cst_10 = arith.constant dense<0xFF800000> : vector<4x8xf32>
    %19 = vector.multi_reduction <maximumf>, %18, %cst_10 [2] : vector<4x8x8xf32> to vector<4x8xf32>
    %20 = vector.shape_cast %19 : vector<4x8xf32> to vector<4x8x1xf32>
    %21 = vector.broadcast %20 : vector<4x8x1xf32> to vector<4x8x8xf32>
    %22 = arith.subf %18, %21 : vector<4x8x8xf32>
    %23 = math.exp %22 : vector<4x8x8xf32>
    %cst_11 = arith.constant dense<0.000000e+00> : vector<4x8xf32>
    %24 = vector.multi_reduction <add>, %23, %cst_11 [2] : vector<4x8x8xf32> to vector<4x8xf32>
    %25 = vector.shape_cast %24 : vector<4x8xf32> to vector<4x8x1xf32>
    %26 = tpu.reciprocal %25 {approx = true} : vector<4x8x1xf32> -> vector<4x8x1xf32>
    %27 = vector.broadcast %26 : vector<4x8x1xf32> to vector<4x8x8xf32>
    %28 = arith.mulf %23, %27 : vector<4x8x8xf32>
    %c0_12 = arith.constant 0 : index
    %c0_13 = arith.constant 0 : index
    %c0_14 = arith.constant 0 : index
    %29 = vector.load %arg13[%c0_12, %c0_13, %c0_14] : memref<4x8x8xf32, #tpu.memory_space<vmem>>, vector<4x8x8xf32>
    "tpu.trace_start"() <{level = 10 : i32, message = "hqs,hsd->hqd"}> : () -> ()
    %cst_15 = arith.constant dense<0.000000e+00> : vector<4x8x8xf32>
    %30 = tpu.matmul %28, %29, %cst_15 {dimension_numbers = #tpu.dot_dimension_numbers<[2], [1], [1], [2], [0, 0, 0, 1, 1, 2], [0], [0]>} : vector<4x8x8xf32>, vector<4x8x8xf32>, vector<4x8x8xf32> -> vector<4x8x8xf32>
    "tpu.trace_stop"() : () -> ()
    %31 = tpu.transpose %30, [1, 0, 2] : vector<4x8x8xf32> -> vector<8x4x8xf32>
    %32 = vector.shape_cast %31 : vector<8x4x8xf32> to vector<8x32xf32>
    %c0_16 = arith.constant 0 : index
    %c0_17 = arith.constant 0 : index
    %33 = vector.load %arg9[%c0_16, %c0_17] : memref<32x32xf32, #tpu.memory_space<vmem>>, vector<32x32xf32>
    %cst_18 = arith.constant dense<0.000000e+00> : vector<8x32xf32>
    %34 = tpu.matmul %32, %33, %cst_18 {dimension_numbers = #tpu.dot_dimension_numbers<[1], [0], [0], [1], [0, 0, 1, 1], [], []>} : vector<8x32xf32>, vector<32x32xf32>, vector<8x32xf32> -> vector<8x32xf32>
    %c0_19 = arith.constant 0 : index
    %c0_20 = arith.constant 0 : index
    %35 = vector.load %arg10[%c0_19, %c0_20] : memref<1x32xf32, #tpu.memory_space<vmem>>, vector<1x32xf32>
    %36 = vector.shape_cast %35 : vector<1x32xf32> to vector<32xf32>
    %37 = vector.shape_cast %36 : vector<32xf32> to vector<1x32xf32>
    %38 = vector.broadcast %37 : vector<1x32xf32> to vector<8x32xf32>
    %39 = arith.addf %34, %38 : vector<8x32xf32>
    %c0_21 = arith.constant 0 : index
    %c0_22 = arith.constant 0 : index
    %c0_23 = arith.constant 0 : index
    %40 = vector.load %arg11[%c0_21, %c0_22, %c0_23] : memref<1x8x32xf32, #tpu.memory_space<vmem>>, vector<1x8x32xf32>
    %41 = vector.shape_cast %40 : vector<1x8x32xf32> to vector<8x32xf32>
    %42 = vector.shape_cast %39 : vector<8x32xf32> to vector<1x8x32xf32>
    tpu.vector_store %arg11[%c0_21, %c0_22, %c0_23], %42 {strides = array<i32>} : memref<1x8x32xf32, #tpu.memory_space<vmem>>, vector<1x8x32xf32>,
    return
  }
  func.func @transform_0(%arg0: i32, %arg1: i32) -> (i32, i32, i32) {
    %c0_i32 = arith.constant 0 : i32
    %c0_i32_0 = arith.constant 0 : i32
    %c0_i32_1 = arith.constant 0 : i32
    return %arg0, %c0_i32, %c0_i32_0 : i32, i32, i32
  }
  func.func @transform_1(%arg0: i32, %arg1: i32) -> (i32, i32) {
    %c0_i32 = arith.constant 0 : i32
    %c0_i32_0 = arith.constant 0 : i32
    %c0_i32_1 = arith.constant 0 : i32
    return %c0_i32, %c0_i32_0 : i32, i32
  }
  func.func @transform_2(%arg0: i32, %arg1: i32) -> (i32, i32) {
    %c0_i32 = arith.constant 0 : i32
    %c0_i32_0 = arith.constant 0 : i32
    %c0_i32_1 = arith.constant 0 : i32
    return %c0_i32, %c0_i32_0 : i32, i32
  }
  func.func @transform_3(%arg0: i32, %arg1: i32) -> (i32, i32) {
    %c0_i32 = arith.constant 0 : i32
    %c0_i32_0 = arith.constant 0 : i32
    %c0_i32_1 = arith.constant 0 : i32
    return %c0_i32, %c0_i32_0 : i32, i32
  }
  func.func @transform_4(%arg0: i32, %arg1: i32) -> (i32, i32) {
    %c0_i32 = arith.constant 0 : i32
    %c0_i32_0 = arith.constant 0 : i32
    %c0_i32_1 = arith.constant 0 : i32
    return %c0_i32, %c0_i32_0 : i32, i32
  }
  func.func @transform_5(%arg0: i32, %arg1: i32) -> (i32, i32) {
    %c0_i32 = arith.constant 0 : i32
    %c0_i32_0 = arith.constant 0 : i32
    %c0_i32_1 = arith.constant 0 : i32
    return %c0_i32, %c0_i32_0 : i32, i32
  }
  func.func @transform_6(%arg0: i32, %arg1: i32) -> (i32, i32) {
    %c0_i32 = arith.constant 0 : i32
    %c0_i32_0 = arith.constant 0 : i32
    %c0_i32_1 = arith.constant 0 : i32
    return %c0_i32, %c0_i32_0 : i32, i32
  }
  func.func @transform_7(%arg0: i32, %arg1: i32) -> (i32, i32) {
    %c0_i32 = arith.constant 0 : i32
    %c0_i32_0 = arith.constant 0 : i32
    %c0_i32_1 = arith.constant 0 : i32
    return %c0_i32, %c0_i32_0 : i32, i32
  }
  func.func @transform_8(%arg0: i32, %arg1: i32) -> (i32, i32) {
    %c0_i32 = arith.constant 0 : i32
    %c0_i32_0 = arith.constant 0 : i32
    %c0_i32_1 = arith.constant 0 : i32
    return %c0_i32, %c0_i32_0 : i32, i32
  }
  func.func @transform_9(%arg0: i32, %arg1: i32) -> (i32, i32, i32) {
    %c0_i32 = arith.constant 0 : i32
    %c0_i32_0 = arith.constant 0 : i32
    return %arg0, %arg1, %c0_i32 : i32, i32, i32
  }
}

</mosaic_0001>

<bundles_post_ra>
// kernel: tpu_custom_call.1
= control target key start
LH: loop header
LB: loop body
LE: loop exit
PB: predicated region body
PF: predicated region fallthrough
CT: control target
= control target key end

     0   :  { %s3792_s0 = inlined_call_operand.hbm [shape: f32[2,8,32], index: 0, kind: input, shape index: {}]   ;;  %s3793_s1 = inlined_call_operand.hbm [shape: f32[32,32], index: 1, kind: input, shape index: {}]   ;;  %s3794_s2 = inlined_call_operand.hbm [shape: f32[32,32], index: 2, kind: input, shape index: {}]   ;;  %s3795_s3 = inlined_call_operand.hbm [shape: f32[32,32], index: 3, kind: input, shape index: {}]   ;;  %s3796_s4 = inlined_call_operand.vmem [shape: f32[1,32], index: 4, kind: input, shape index: {}]   ;;  %s3797_s5 = inlined_call_operand.vmem [shape: f32[1,32], index: 5, kind: input, shape index: {}]   ;;  %s3798_s6 = inlined_call_operand.vmem [shape: f32[1,32], index: 6, kind: input, shape index: {}]   ;;  %s3799_s7 = inlined_call_operand.hbm [shape: f32[32,32], index: 7, kind: input, shape index: {}]   ;;  %s3800_s8 = inlined_call_operand.vmem [shape: f32[1,32], index: 8, kind: input, shape index: {}]   ;;  %s3801_s9 = inlined_call_operand.hbm [shape: f32[2,8,32], index: 9, kind: output, shape index: {}]  }
   0x1   :  { %3804 = sst [smem:[#allocation20_spill]] %s3793_s1 }
   0x2   :  { %3805 = sst [smem:[#allocation21_spill]] %s3794_s2 }
   0x3   :  { %3806 = sst [smem:[#allocation22_spill]] %s3795_s3 }
   0x4   :  { %3807 = sst [smem:[#allocation23_spill]] %s3799_s7 }
   0x5   :  { %14 = vsyncpa [#allocation5], 0 }
   0x6   :  { %16 = vsyncpa [#allocation5 + $0x1], 0 }
   0x7   :  { %17 = vsyncpa [#allocation8], 0 }
   0x8   :  { %18 = vsyncpa [#allocation11], 0 }
   0x9   :  { %19 = vsyncpa [#allocation6], 0 }
   0xa   :  { %21 = vsyncpa [#allocation6 + $0x1], 0  ;;  %s3367_s30 = smov 0   ;;  %s3369_s10 = smov 0  }
   0xb   :  { %s3371_s11 = smov 0   ;;  %s3373_s12 = smov 0  }
   0xc   :  { %s3375_s13 = smov 0   ;;  %s3377_s14 = smov 0  }
   0xd LB: > { %3808 = sst [smem:[#allocation18_spill]] %s3293_s13  ;;  %s2783_s15 = sadd.s32 4294967295, %s3297_s14   ;;  %s3297_s14 = sphi %s3377_s14, %s27_s14   ;;  %s3293_s13 = sphi %s3375_s13, %s3825_s13   ;;  %s3289_s12 = sphi %s3373_s12, %s3824_s12   ;;  %s3285_s11 = sphi %s3371_s11, %s3828_s11   ;;  %s3281_s10 = sphi %s3369_s10, %s3827_s10   ;;  %s3277_s30 = sphi %s3367_s30, %s3826_s30  }
   0xe   : > { %p2785_p0 = scmp.ge.s32.totalorder %s3297_s14, 1  ;;  %p3401_p1 = scmp.eq.s32.totalorder %s2783_s15, 0 }
   0xf   : > { %p266_p2 = scmp.lt.s32.totalorder %s3297_s14, 3  ;;  %s3299_s18 = smov [#allocation7]  }
  0x10   : > { %s278_s19 = sshll.u32 %s3299_s18, 4  ;;  %s3300_s21 = smov [#allocation10]   ;;  %s279_s19 = int_to_ptr.vmem [resolvable:$true] %s278_s19 }
  0x11   : > { %p3406_p3 = pnand %p2785_p0, %p266_p2  ;;  %s304_s22 = sshll.u32 %s3300_s21, 4  ;;  %s305_s22 = int_to_ptr.vmem [resolvable:$true] %s304_s22 }
  0x12   : > { %s3301_s23 = smov [#allocation9]   ;;  %s3088_s25 = scalar_lea.vmem %s279_s19, 512 }
  0x13   : > { %p2966_p4 = pneg %p3406_p3  ;;  %s291_s24 = sshll.u32 %s3301_s23, 4  ;;  %s292_s24 = int_to_ptr.vmem [resolvable:$true] %s291_s24 }
  0x14   : > { %p3089_p8 = scmp.ne.s32.totalorder %s279_s19, %s3088_s25  ;;  %p3096_p11 = scmp.lt.s32.totalorder %s279_s19, %s279_s19 }
  0x15   : > { %p3415_p6 = pnand %p2966_p4, %p3401_p1  ;;  %p3097_p12 = scmp.lt.s32.totalorder %s3088_s25, %s3088_s25 }
  0x17   : > { %p3079_p7 = pneg %p3415_p6  ;;  %p3098_p13 = por %p3097_p12, %p3096_p11 }
  0x19   : > { %p3091_p9 = pnand %p3089_p8, %p3079_p7 }
  0x1b   : > { %p3092_p10 = pneg %p3091_p9 }
  0x1d   : > { %p3099_p0 = pnand %p3098_p13, %p3092_p10 }
  0x1f   : > { %3102 = shalt.err (!%p3099_p0)
}
  0x20   : > { %s3302_s26 = smov 128   ;;  %s3303_s27 = smov 8  }
  0x21   : > { %s3812_s1 = sld [smem:[#allocation20_spill]]  ;;  %s3114_s18 = scalar_lea.vmem %s305_s22, 512 }
  0x22   : > { %p3115_p2 = scmp.ne.s32.totalorder %s305_s22, %s3114_s18  ;;  %p3122_p9 = scmp.lt.s32.totalorder %s305_s22, %s305_s22 }
  0x23   : > { %p3123_p10 = scmp.lt.s32.totalorder %s3114_s18, %s3114_s18 }
  0x24   : > { %p3117_p4 = pnand %p3115_p2, %p3079_p7 }
  0x25   : > { %p3124_p11 = por %p3123_p10, %p3122_p9 }
  0x26   : > { %p3118_p8 = pneg %p3117_p4 }
  0x27   : > { %2969 = dma.hbm_to_vmem [thread:$0]  (!%p3415_p6), %s3812_s1, 512, %s279_s19, [#allocation8], %s3302_s26, %s3302_s26, %s3303_s27  }
  0x28   : > { %p3125_p12 = pnand %p3124_p11, %p3118_p8 }
  0x2a   : > { %3128 = shalt.err (!%p3125_p12)
}
  0x2b   : > { %s3813_s3 = sld [smem:[#allocation22_spill]]  ;;  %s3140_s19 = scalar_lea.vmem %s292_s24, 512 }
  0x2c   : > { %p3141_p13 = scmp.ne.s32.totalorder %s292_s24, %s3140_s19  ;;  %p3148_p4 = scmp.lt.s32.totalorder %s292_s24, %s292_s24 }
  0x2d   : > { %p3149_p8 = scmp.lt.s32.totalorder %s3140_s19, %s3140_s19 }
  0x2e   : > { %p3143_p0 = pnand %p3141_p13, %p3079_p7 }
  0x2f   : > { %p3150_p9 = por %p3149_p8, %p3148_p4 }
  0x30   : > { %p3144_p2 = pneg %p3143_p0 }
  0x31   : > { %2975 = dma.hbm_to_vmem [thread:$0]  (!%p3415_p6), %s3813_s3, 512, %s305_s22, [#allocation11], %s3302_s26, %s3302_s26, %s3303_s27  }
  0x32   : > { %p3151_p10 = pnand %p3150_p9, %p3144_p2 }
  0x34   : > { %3154 = shalt.err (!%p3151_p10)
}
  0x35   : > { %s3814_s2 = sld [smem:[#allocation21_spill]]  ;;  %s3304_s22 = smov [#allocation12]  }
  0x36   : > { %s326_s29 = sshll.u32 %s3304_s22, 4  ;;  %s327_s29 = int_to_ptr.vmem [resolvable:$true] %s326_s29 }
  0x37   : > { %s3166_s18 = scalar_lea.vmem %s327_s29, 512  ;;  %p3174_p0 = scmp.lt.s32.totalorder %s327_s29, %s327_s29 }
  0x38   : > { %p3167_p11 = scmp.ne.s32.totalorder %s327_s29, %s3166_s18  ;;  %p3175_p2 = scmp.lt.s32.totalorder %s3166_s18, %s3166_s18 }
  0x3a   : > { %p3169_p12 = pnand %p3167_p11, %p3079_p7  ;;  %p3176_p4 = por %p3175_p2, %p3174_p0 }
  0x3b   : > { %2972 = dma.hbm_to_vmem [thread:$0]  (!%p3415_p6), %s3814_s2, 512, %s292_s24, [#allocation8], %s3302_s26, %s3302_s26, %s3303_s27  }
  0x3c   : > { %p3170_p13 = pneg %p3169_p12 }
  0x3e   : > { %p3177_p8 = pnand %p3176_p4, %p3170_p13 }
  0x40   : > { %3180 = shalt.err (!%p3177_p8)
}
  0x41   : > { %s3815_s7 = sld [smem:[#allocation23_spill]]  ;;  %s2784_s20 = sadd.s32 4294967294, %s3297_s14  }
  0x42   : > { %s39_s23 = sadd.s32 1, %s3293_s13  ;;  %s46_s19 = sadd.s32 1, %s3285_s11 }
  0x43   : > { %p41_p7 = scmp.ge.s32.totalorder %s39_s23, 2  ;;  %p53_p9 = scmp.ne.s32.totalorder %s3285_s11, %s3281_s10 }
  0x44   : > { %p54_p10 = scmp.eq.s32.totalorder %s3297_s14, 0  ;;  %p59_p12 = scmp.ne.s32.totalorder %s3281_s10, %s3277_s30 }
  0x45   : > { %s3830_s23 = smov (%p41_p7, %s39_s23), 0  ;;  %p259_p4 = scmp.eq.s32.totalorder %s2784_s20, 1 }
  0x46   : > { %3816 = sst [smem:[#allocation19_spill]] %s3830_s23  ;;  %p3473_p11 = por %p54_p10, %p53_p9 }
  0x47   : > { %2978 = dma.hbm_to_vmem [thread:$0]  (!%p3415_p6), %s3815_s7, 512, %s327_s29, [#allocation11], %s3302_s26, %s3302_s26, %s3303_s27  }
  0x48   : > { %s43_s26 = ssub.s32 %s3293_s13, %s3830_s23  ;;  %p253_p6 = scmp.eq.s32.totalorder %s2783_s15, 1 }
  0x49   : > { %p44_p13 = scmp.eq.s32.totalorder %s43_s26, 0  ;;  %p3485_p0 = por %p3401_p1, %p59_p12 }
  0x4a   : > { %p3489_p2 = por %p253_p6, %p53_p9  ;;  %p3496_p8 = por %p259_p4, %p59_p12 }
  0x4b   : > { %s3494_s22 = scalar_select %p44_p13, %s3285_s11, %s46_s19  }
  0x4c   : > { %s3820_s29 = scalar_select %p3496_p8, 1, 0 }
  0x4d   : > { %p2991_p7 = scmp.lt.s32.totalorder %s3297_s14, 2  ;;  %s343_s18 = sand.u32 1, %s3285_s11  }
  0x4e   : > { %s2792_s15 = sshll.u32 %s3293_s13, 7  ;;  %s2791_s24 = sshll.u32 %s343_s18, 3 }
  0x4f   : > { %s352_s1 = scalar_lea.hbm %s3792_s0, %s2792_s15  ;;  %s347_s2 = scalar_lea.vmem [#allocation4], %s2791_s24 }
  0x50   : > { %s354_s3 = sshll.u32 %s347_s2, 4  ;;  %p3508_p9 = pnand %p2991_p7, %p3473_p11  ;;  %s355_s3 = int_to_ptr.vmem [resolvable:$true] %s354_s3 }
  0x51   : > { %s344_s20 = scalar_lea.sflag [#allocation5], %s343_s18  ;;  %s3194_s19 = scalar_lea.vmem %s355_s3, 128 }
  0x52   : > { %p3183_p10 = pneg %p3508_p9  ;;  %p3195_p12 = scmp.ne.s32.totalorder %s355_s3, %s3194_s19 }
  0x53   : > { %s3305_s23 = smov [#allocation4]  }
  0x54   : > { %p3197_p6 = pnand %p3195_p12, %p3183_p10  ;;  %s3199_s13 = sshll.u32 %s3305_s23, 4  ;;  %s3200_s13 = int_to_ptr.vmem [resolvable:$false] %s3199_s13 }
  0x55   : > { %s3201_s15 = scalar_lea.vmem %s3200_s13, 256  ;;  %p3202_p4 = scmp.lt.s32.totalorder %s355_s3, %s3200_s13 }
  0x56   : > { %p3198_p13 = pneg %p3197_p6  ;;  %p3203_p5 = scmp.lt.s32.totalorder %s3201_s15, %s3194_s19 }
  0x58   : > { %p3204_p8 = por %p3203_p5, %p3202_p4 }
  0x5a   : > { %p3205_p11 = pnand %p3204_p8, %p3198_p13 }
  0x5c   : > { %3208 = shalt.err (!%p3205_p11)
}
  0x5d   : > { %2982 = dma.hbm_to_vmem [thread:$0]  (!%p3508_p9), %s352_s1, 128, %s355_s3, %s344_s20  }
  0x5e   : > { %363 = sbr.rel (%p3406_p3) target bundleno = 1799 (0x707), region = 56  ;;  %s3519_s2 = sand.u32 (!%p3406_p3), 1, %s3281_s10  }
  0x5f   : > { %s2794_s23 = sshll.u32 (!%p3406_p3), %s3519_s2, 3  ;;  %s366_s25 = scalar_lea.sflag (!%p3406_p3), [#allocation5], %s3519_s2 }
  0x60   : > { %s369_s13 = scalar_lea.vmem (!%p3406_p3), [#allocation4], %s2794_s23 }
  0x63   : > { %3260 = dma.done.wait (%p3485_p0), %s366_s25, 128  }
  0x64   : > { %3262 = vsyncadd (%p3485_p0), %s366_s25, 4294967168 }
  0x65   : > { %3264 = dma.done.wait (%p3401_p1), [#allocation8], 1024  }
  0x66   : > { %3266 = vsyncadd (%p3401_p1), [#allocation8], 4294966272 }
  0x67   : > { %3268 = dma.done.wait (%p3401_p1), [#allocation11], 1024  }
  0x68   : > { %3270 = vsyncadd (%p3401_p1), [#allocation11], 4294966272  ;;  %v3306_v0 = vmov 0.0   ;;  %vm3307_vm0 = vmmov 0   ;;  %v428_v1 = vld [vmem:[#allocation9 + $0x18] sm:$0xff]  ;;  %v427_v2 = vld [vmem:[#allocation9 + $0x10] sm:$0xff]  ;;  %v606_v20 = vlaneseq }
  0x69   : > { %2862 = vmatprep.subr.mxu0 %v3306_v0  ;;  %2870 = vmatprep.mubr.msk.f32.mxu0 %vm3307_vm0, %v3306_v0  ;;  %v426_v3 = vld [vmem:[#allocation9 + $0x8] sm:$0xff]  ;;  %v425_v4 = vld [vmem:[#allocation9] sm:$0xff]  ;;  %v3545_v5 = vld [vmem:[%s369_s13] sm:$0xff]  ;;  %vm436_vm1 = vcmask 261120   ;;  %s3308_s7 = smov 104   ;;  %s3309_s16 = smov 120  }
  0x6a   : > { %2873 = vmatprep.subr.mxu1 %v3306_v0  ;;  %2881 = vmatprep.mubr.msk.f32.mxu1 %vm3307_vm0, %v3306_v0  ;;  %v1546_v6 = vld [vmem:[#allocation7 + $0x18] sm:$0xff]  ;;  %v1545_v7 = vld [vmem:[#allocation7 + $0x10] sm:$0xff]  ;;  %v1544_v8 = vld [vmem:[#allocation7 + $0x8] sm:$0xff]  ;;  %s3310_s18 = smov 112   ;;  %v3311_v18 = vmov 1983009808  }
  0x6b   : > { %2863 = vmatpush3.msra.mxu0 %v428_v1  ;;  %v1543_v9 = vld [vmem:[#allocation7] sm:$0xff]  ;;  %v2800_v10 = vld [vmem:[%s3797_s5] ss:$0 sm:$0xff]  ;;  %v604_v19 = vunpack.c.l.s4 %v3311_v18  ;;  %v607_v22 = vshrl.u32 %v606_v20, 7  ;;  %v3312_v23 = vmov 1934713408  }
  0x6c   : > { %2864 = vmatprep.subr.mxu0 %v3306_v0  ;;  %v2806_v14 = vld [vmem:[%s3796_s4] ss:$0 sm:$0xff]  ;;  %v636_v24 = vunpack.c.l.s4 %v3312_v23  ;;  %vm1385_vm2 = vcmask 64512   ;;  %s3313_s26 = smov 16   ;;  %s3314_s20 = smov 8   ;;  %vm2560_vm3 = vcmask 130048  }
  0x6d   : > { %2865 = vmatpush3.msra.mxu0 %v427_v2  ;;  %v605_v21 = vunpack.c.0.s8 %v604_v19  ;;  %s3315_s19 = smov 24   ;;  %vm2562_vm4 = vcmask 195584   ;;  %s2823_s13 = sshll.u32 %s3289_s12, 7 }
  0x6e   : > { %2866 = vmatprep.subr.mxu0 %v3306_v0  ;;  %v637_v29 = vunpack.c.0.s8 %v636_v24  ;;  %s419_s1 = scalar_lea.vmem [#allocation13], %s2794_s23  ;;  %s3749_s17 = scalar_lea.hbm %s3801_s9, %s2823_s13 }
  0x6f   : > { %2867 = vmatpush3.msra.mxu0 %v426_v3  ;;  %v3574_v27 = vsub.s32 %v605_v21, %v607_v22  ;;  %s2664_s3 = sshll.u32 %s419_s1, 4  ;;  %s2650_s27 = scalar_lea.sflag [#allocation6], %s3519_s2  ;;  %s2665_s3 = int_to_ptr.vmem [resolvable:$true] %s2664_s3 }
  0x70   : > { %2868 = vmatprep.subr.mxu0 %v3306_v0  ;;  %v3579_v37 = vsub.s32 %v637_v29, %v607_v22  ;;  %s3316_s12 = smov [#allocation13]  }
  0x71   : > { %2869 = vmatpush3.msra.mxu0 %v425_v4  ;;  %s3213_s23 = sshll.u32 %s3316_s12, 4  ;;  %s3214_s23 = int_to_ptr.vmem [resolvable:$false] %s3213_s23 }
  0x72   : > { %2871 = vmatmul.mubr.msk.f32.vlgmr.msra.gmra.mxu0 %vm436_vm1, %v3545_v5  ;;  %2884 = vmatprep.subr.mxu0 %v3306_v0  ;;  %s3215_s24 = scalar_lea.vmem %s3214_s23, 256  ;;  %p3216_p0 = scmp.lt.s32.totalorder %s2665_s3, %s3214_s23 }
  0x73   : > { %2885 = vmatpush3.msra.mxu0 %v1546_v6  ;;  %2892 = vmatprep.mubr.msk.f32.mxu0 %vm3307_vm0, %v3306_v0 }
  0x74   : > { %2886 = vmatprep.subr.mxu0 %v3306_v0 }
  0x75   : > { %2887 = vmatpush3.msra.mxu0 %v1545_v7 }
  0x76   : > { %2888 = vmatprep.subr.mxu0 %v3306_v0 }
  0x77   : > { %2889 = vmatpush3.msra.mxu0 %v1544_v8 }
  0x78   : > { %2890 = vmatprep.subr.mxu0 %v3306_v0 }
  0x79   : > { %2891 = vmatpush3.msra.mxu0 %v1543_v9 }
  0x7a   : > { %2893 = vmatmul.mubr.msk.f32.vlgmr.msra.gmra.mxu0 %vm436_vm1, %v3545_v5  ;;  %2915 = vmatprep.subr.mxu0 %v3306_v0 }
  0x7b   : > { %2917 = vmatprep.mubr.msk.f32.mxu0 %vm3307_vm0, %v3306_v0 }
 0x132   : > { %v506_v11 = vpop.f32.mrf.mxu0 }
 0x133   : > { %v507_v12 = vadd.f32 %v2800_v10, %v506_v11 }
 0x134   : > { %v2872_v13 = vpop.f32.mrf.mxu0 }
 0x135   : > { %598 = vrot.lane.b32.xlu1 %v507_v12, %s3308_s7  ;;  %592 = vrot.lane.b32.xlu0 %v507_v12, %s3309_s16 }
 0x139   : > { %595 = vrot.lane.b32.xlu0 %v507_v12, %s3310_s18 }
 0x13a   : > { %v1624_v15 = vpop.f32.mrf.mxu0 }
 0x13b   : > { %v3570_v16 = vadd.f32 %v2806_v14, %v1624_v15 }
 0x13c   : > { %v2894_v17 = vpop.f32.mrf.mxu0 }
 0x13d   : > { %1629 = vrot.lane.b32.xlu1 %v3570_v16, %s3309_s16 }
 0x1a7   : > { %v599_v25 = vpop.permute.xlu1 %598  ;;  %v593_v26 = vpop.permute.xlu0 %592 }
 0x1a8   : > { %v617_v28 = vcombine.low %v593_v26, %v599_v25  ;;  %v618_v31 = vcombine.high %v593_v26, %v599_v25 }
 0x1aa   : > { %v625_v34 = vrot.slane %v617_v28, %v3574_v27  ;;  %v632_v38 = vrot.slane %v618_v31, %v3574_v27 }
 0x1ab   : > { %v596_v30 = vpop.permute.xlu0 %595 }
 0x1ac   : > { %v601_v32 = vcombine.low %v507_v12, %v596_v30  ;;  %v602_v33 = vcombine.high %v507_v12, %v596_v30 }
 0x1ae   : > { %v609_v35 = vrot.slane %v601_v32, %v3574_v27  ;;  %v616_v36 = vrot.slane %v602_v33, %v3574_v27 }
 0x1af   : > { %v3594_v51 = vpop.permute.xlu1 %1629 }
 0x1b0   : > { %v634_v39 = vcombine.high %v609_v35, %v625_v34  ;;  %v633_v40 = vcombine.low %v609_v35, %v625_v34  ;;  %v649_v43 = vcombine.low %v616_v36, %v632_v38  ;;  %v650_v46 = vcombine.high %v616_v36, %v632_v38 }
 0x1b2   : > { %v648_v41 = vrot.slane %v634_v39, %v3579_v37  ;;  %v641_v42 = vrot.slane %v633_v40, %v3579_v37  ;;  %v657_v45 = vrot.slane %v649_v43, %v3579_v37  ;;  %v664_v48 = vrot.slane %v650_v46, %v3579_v37  ;;  %v511_v43 = vld [vmem:[#allocation10 + $0x8] sm:$0xff] }
 0x1b4   : > { %733 = vxpose.xlu0.b32.start.end [1/1] (short) (narrow) %v648_v41, 8  ;;  %669 = vxpose.xlu1.b32.start.end [1/1] (short) (narrow) %v641_v42, 8  ;;  %v665_v44 = vcombine.high %v641_v42, %v3306_v0  ;;  %v666_v47 = vcombine.high %v648_v41, %v3306_v0  ;;  %v667_v49 = vcombine.high %v657_v45, %v3306_v0  ;;  %v513_v41 = vld [vmem:[#allocation10 + $0x18] sm:$0xff]  ;;  %v512_v42 = vld [vmem:[#allocation10 + $0x10] sm:$0xff] }
 0x1b5   : > { %v668_v50 = vcombine.high %v664_v48, %v3306_v0  ;;  %2874 = vmatpush3.msra.mxu1 %v513_v41 }
 0x1b6   : > { %2875 = vmatprep.subr.mxu1 %v3306_v0 }
 0x1b7   : > { %2876 = vmatpush3.msra.mxu1 %v512_v42 }
 0x1b8   : > { %701 = vxpose.xlu0.b32.start.end [1/1] (short) (narrow) %v665_v44, 8  ;;  %797 = vxpose.xlu1.b32.start.end [1/1] (short) (narrow) %v657_v45, 8  ;;  %v510_v44 = vld [vmem:[#allocation10] sm:$0xff] }
 0x1b9   : > { %2877 = vmatprep.subr.mxu1 %v3306_v0 }
 0x1ba   : > { %2878 = vmatpush3.msra.mxu1 %v511_v43 }
 0x1bb   : > { %2879 = vmatprep.subr.mxu1 %v3306_v0 }
 0x1bc   : > { %765 = vxpose.xlu0.b32.start.end [1/1] (short) (narrow) %v666_v47, 8  ;;  %861 = vxpose.xlu1.b32.start.end [1/1] (short) (narrow) %v664_v48, 8 }
 0x1bd   : > { %2880 = vmatpush3.msra.mxu1 %v510_v44 }
 0x1be   : > { %2882 = vmatmul.mubr.msk.f32.vlgmr.msra.gmra.mxu1 %vm436_vm1, %v3545_v5  ;;  %2895 = vmatprep.subr.mxu1 %v3306_v0 }
 0x1bf   : > { %2897 = vmatprep.mubr.msk.f32.mxu1 %vm3307_vm0, %v3306_v0 }
 0x1c0   : > { %829 = vxpose.xlu0.b32.start.end [1/1] (short) (narrow) %v667_v49, 8 }
 0x1c4   : > { %893 = vxpose.xlu0.b32.start.end [1/1] (short) (narrow) %v668_v50, 8 }
 0x1da   : > { %1635 = vrot.lane.b32.xlu1 %v3570_v16, %s3308_s7 }
 0x1ed   : > { %1632 = vrot.lane.b32.xlu0 %v3570_v16, %s3310_s18 }
 0x230   : > { %v749_v52 = vpop.trf.xlu0  ;;  %v685_v53 = vpop.trf.xlu1 }
 0x231   : > { %v925_v60 = vcombine.low %v685_v53, %v749_v52  ;;  %v926_v10 = vcombine.high %v685_v53, %v749_v52 }
 0x233   : > { %v933_v1 = vrot.slane %v925_v60, %v3574_v27  ;;  %v940_v20 = vrot.slane %v926_v10, %v3574_v27 }
 0x234   : > { %v717_v54 = vpop.trf.xlu0  ;;  %v813_v55 = vpop.trf.xlu1 }
 0x238   : > { %v781_v56 = vpop.trf.xlu0  ;;  %v877_v59 = vpop.trf.xlu1 }
 0x239   : > { %v941_v57 = vcombine.low %v717_v54, %v781_v56  ;;  %v957_v62 = vcombine.low %v813_v55, %v877_v59  ;;  %v942_v4 = vcombine.high %v717_v54, %v781_v56  ;;  %v958_v7 = vcombine.high %v813_v55, %v877_v59 }
 0x23b   : > { %v949_v61 = vrot.slane %v941_v57, %v3574_v27  ;;  %v965_v8 = vrot.slane %v957_v62, %v3574_v27  ;;  %v956_v14 = vrot.slane %v942_v4, %v3574_v27  ;;  %v972_v15 = vrot.slane %v958_v7, %v3574_v27 }
 0x23c   : > { %v845_v58 = vpop.trf.xlu0 }
 0x23d   : > { %v989_v6 = vcombine.low %v933_v1, %v949_v61  ;;  %v990_v19 = vcombine.high %v933_v1, %v949_v61  ;;  %v1005_v26 = vcombine.low %v940_v20, %v956_v14  ;;  %v1006_v33 = vcombine.high %v940_v20, %v956_v14 }
 0x23f   : > { %v997_v17 = vrot.slane %v989_v6, %v3579_v37  ;;  %v1004_v25 = vrot.slane %v990_v19, %v3579_v37  ;;  %v1013_v32 = vrot.slane %v1005_v26, %v3579_v37  ;;  %v1020_v38 = vrot.slane %v1006_v33, %v3579_v37 }
 0x240   : > { %v909_v63 = vpop.trf.xlu0 }
 0x241   : > { %v973_v2 = vcombine.low %v845_v58, %v909_v63  ;;  %v974_v3 = vcombine.high %v845_v58, %v909_v63 }
 0x243   : > { %v981_v9 = vrot.slane %v973_v2, %v3574_v27  ;;  %v988_v11 = vrot.slane %v974_v3, %v3574_v27 }
 0x245   : > { %v1021_v12 = vcombine.low %v965_v8, %v981_v9  ;;  %v1022_v13 = vcombine.high %v965_v8, %v981_v9  ;;  %v1037_v24 = vcombine.low %v972_v15, %v988_v11  ;;  %v1038_v31 = vcombine.high %v972_v15, %v988_v11 }
 0x247   : > { %v1029_v18 = vrot.slane %v1021_v12, %v3579_v37  ;;  %v1036_v23 = vrot.slane %v1022_v13, %v3579_v37  ;;  %v1045_v30 = vrot.slane %v1037_v24, %v3579_v37  ;;  %v1052_v36 = vrot.slane %v1038_v31, %v3579_v37 }
 0x249   : > { %v1054_v21 = vcombine.high %v997_v17, %v1029_v18  ;;  %v1053_v22 = vcombine.low %v997_v17, %v1029_v18  ;;  %v1055_v28 = vcombine.low %v1004_v25, %v1036_v23  ;;  %v1056_v29 = vcombine.high %v1004_v25, %v1036_v23 }
 0x24a   : > { %v1057_v34 = vcombine.low %v1013_v32, %v1045_v30  ;;  %v1058_v35 = vcombine.high %v1013_v32, %v1045_v30  ;;  %v1059_v39 = vcombine.low %v1020_v38, %v1052_v36  ;;  %v1060_v40 = vcombine.high %v1020_v38, %v1052_v36 }
 0x24b   : > { %1093 = vxpose.xlu0.b32.start.end [1/1] (short) (narrow) %v1054_v21, 8  ;;  %1061 = vxpose.xlu1.b32.start.end [1/1] (short) (narrow) %v1053_v22, 8 }
 0x24c   : > { %v1636_v46 = vpop.permute.xlu1 %1635 }
 0x24d   : > { %v1654_v49 = vcombine.low %v3594_v51, %v1636_v46  ;;  %v1655_v50 = vcombine.high %v3594_v51, %v1636_v46 }
 0x24f   : > { %1125 = vxpose.xlu0.b32.start.end [1/1] (short) (narrow) %v1055_v28, 8  ;;  %1157 = vxpose.xlu1.b32.start.end [1/1] (short) (narrow) %v1056_v29, 8  ;;  %v1662_v55 = vrot.slane %v1654_v49, %v3574_v27  ;;  %v1669_v56 = vrot.slane %v1655_v50, %v3574_v27 }
 0x253   : > { %1189 = vxpose.xlu0.b32.start.end [1/1] (short) (narrow) %v1057_v34, 8  ;;  %1221 = vxpose.xlu1.b32.start.end [1/1] (short) (narrow) %v1058_v35, 8 }
 0x257   : > { %1253 = vxpose.xlu0.b32.start.end [1/1] (short) (narrow) %v1059_v39, 8  ;;  %1285 = vxpose.xlu1.b32.start.end [1/1] (short) (narrow) %v1060_v40, 8 }
 0x25f   : > { %v1633_v45 = vpop.permute.xlu0 %1632 }
 0x260   : > { %v1638_v47 = vcombine.low %v3570_v16, %v1633_v45  ;;  %v1639_v48 = vcombine.high %v3570_v16, %v1633_v45 }
 0x262   : > { %v1646_v54 = vrot.slane %v1638_v47, %v3574_v27  ;;  %v1653_v5 = vrot.slane %v1639_v48, %v3574_v27 }
 0x264   : > { %v1670_v59 = vcombine.low %v1646_v54, %v1662_v55  ;;  %v1671_v60 = vcombine.high %v1646_v54, %v1662_v55  ;;  %v1686_v61 = vcombine.low %v1653_v5, %v1669_v56  ;;  %v1687_v16 = vcombine.high %v1653_v5, %v1669_v56 }
 0x266   : > { %v1678_v2 = vrot.slane %v1670_v59, %v3579_v37  ;;  %v1685_v3 = vrot.slane %v1671_v60, %v3579_v37  ;;  %v1694_v4 = vrot.slane %v1686_v61, %v3579_v37  ;;  %v1701_v6 = vrot.slane %v1687_v16, %v3579_v37 }
 0x268   : > { %v1706_v13 = vcombine.low %v1678_v2, %v1685_v3  ;;  %v2808_v14 = vcombine.high %v1678_v2, %v1685_v3  ;;  %v1722_v15 = vcombine.low %v1694_v4, %v1701_v6  ;;  %v2809_v17 = vcombine.high %v1694_v4, %v1701_v6  ;;  %v2802_v3 = vld [vmem:[%s3798_s6] ss:$0 sm:$0xff] }
 0x26a   : > { %v1713_v24 = vrot.slane %v1706_v13, %v3574_v27  ;;  %v1721_v25 = vrot.slane %v2808_v14, %v3574_v27  ;;  %v1729_v26 = vrot.slane %v1722_v15, %v3574_v27  ;;  %v1737_v28 = vrot.slane %v2809_v17, %v3574_v27 }
 0x26c   : > { %v1738_v38 = vcombine.low %v1713_v24, %v1721_v25  ;;  %v1754_v39 = vcombine.low %v1729_v26, %v1737_v28  ;;  %v1739_v42 = vcombine.high %v1713_v24, %v1721_v25  ;;  %v1755_v43 = vcombine.high %v1729_v26, %v1737_v28 }
 0x26e   : > { %v1746_v40 = vrot.slane %v1738_v38, %v3579_v37  ;;  %v1762_v41 = vrot.slane %v1754_v39, %v3579_v37  ;;  %v1753_v48 = vrot.slane %v1739_v42, %v3579_v37  ;;  %v1769_v49 = vrot.slane %v1755_v43, %v3579_v37 }
 0x270   : > { %v1770_v45 = vcombine.low %v1746_v40, %v1762_v41  ;;  %v1771_v47 = vcombine.high %v1746_v40, %v1762_v41  ;;  %v1773_v54 = vcombine.high %v1753_v48, %v1769_v49 }
 0x27e   : > { %v587_v5 = vpop.f32.mrf.mxu1 }
 0x27f   : > { %v588_v4 = vadd.f32 %v2802_v3, %v587_v5 }
 0x280   : > { %v2883_v55 = vpop.f32.mrf.mxu1 }
 0x2c7   : > { %v1109_v52 = vpop.trf.xlu0  ;;  %v1077_v53 = vpop.trf.xlu1 }
 0x2cb   : > { %v1141_v57 = vpop.trf.xlu0  ;;  %v1173_v58 = vpop.trf.xlu1 }
 0x2cc   : > { %v1317_v62 = vcombine.low %v1077_v53, %v1141_v57  ;;  %v1325_v63 = vcombine.low %v1109_v52, %v1173_v58  ;;  %v1772_v52 = vcombine.low %v1753_v48, %v1769_v49 }
 0x2ce   : > { %v1324_v7 = vrot.slane %v1317_v62, %v3574_v27  ;;  %v1332_v8 = vrot.slane %v1325_v63, %v3574_v27 }
 0x2cf   : > { %v1205_v1 = vpop.trf.xlu0  ;;  %v1237_v51 = vpop.trf.xlu1 }
 0x2d0   : > { %v1349_v18 = vcombine.low %v1324_v7, %v1332_v8  ;;  %v1350_v19 = vcombine.high %v1324_v7, %v1332_v8 }
 0x2d2   : > { %v1357_v29 = vrot.slane %v1349_v18, %v3579_v37  ;;  %v1364_v30 = vrot.slane %v1350_v19, %v3579_v37 }
 0x2d3   : > { %v1269_v9 = vpop.trf.xlu0  ;;  %v1301_v10 = vpop.trf.xlu1 }
 0x2d4   : > { %v1333_v11 = vcombine.low %v1205_v1, %v1269_v9  ;;  %v1341_v12 = vcombine.low %v1237_v51, %v1301_v10 }
 0x2d6   : > { %v1340_v20 = vrot.slane %v1333_v11, %v3574_v27  ;;  %v1348_v21 = vrot.slane %v1341_v12, %v3574_v27 }
 0x2d8   : > { %v1365_v22 = vcombine.low %v1340_v20, %v1348_v21  ;;  %v1366_v23 = vcombine.high %v1340_v20, %v1348_v21 }
 0x2da   : > { %v1373_v31 = vrot.slane %v1365_v22, %v3579_v37  ;;  %v1380_v32 = vrot.slane %v1366_v23, %v3579_v37 }
 0x2dc   : > { %v1381_v33 = vcombine.low %v1357_v29, %v1373_v31  ;;  %v1382_v34 = vcombine.high %v1357_v29, %v1373_v31  ;;  %v1383_v35 = vcombine.low %v1364_v30, %v1380_v32  ;;  %v1384_v36 = vcombine.high %v1364_v30, %v1380_v32 }
 0x2de   : > { %1386 = vst.msk [vmem:[#allocation2] sm:$0xff] %vm1385_vm2, %v1381_v33  ;;  %1387 = vst.msk [vmem:[#allocation2 + $0x8] sm:$0xff] %vm1385_vm2, %v1382_v34 }
 0x2df   : > { %1388 = vst.msk [vmem:[#allocation2 + $0x10] sm:$0xff] %vm1385_vm2, %v1383_v35  ;;  %1389 = vst.msk [vmem:[#allocation2 + $0x18] sm:$0xff] %vm1385_vm2, %v1384_v36 }
 0x2e5   : > { %v1774_v44 = vld [vmem:[#allocation2] sm:$0xff]  ;;  %v1775_v46 = vld [vmem:[#allocation2 + $0x8] sm:$0xff] }
 0x2e6   : > { %2896 = vmatpush3.msra.mxu1 %v1774_v44  ;;  %v1776_v50 = vld [vmem:[#allocation2 + $0x10] sm:$0xff]  ;;  %v1777_v53 = vld [vmem:[#allocation2 + $0x18] sm:$0xff] }
 0x2e7   : > { %2898 = vmatmul.mubr.msk.f32.vlgmr.msra.gmra.mxu1 %vm1385_vm2, %v1770_v45  ;;  %2900 = vmatprep.subr.mxu1 %v3306_v0 }
 0x2e8   : > { %2901 = vmatpush3.msra.mxu1 %v1775_v46  ;;  %2902 = vmatprep.mubr.msk.f32.mxu1 %vm3307_vm0, %v3306_v0 }
 0x2e9   : > { %2905 = vmatprep.subr.mxu1 %v3306_v0 }
 0x2eb   : > { %2903 = vmatmul.mubr.msk.f32.vlgmr.msra.gmra.mxu1 %vm1385_vm2, %v1771_v47 }
 0x2ec   : > { %2906 = vmatpush3.msra.mxu1 %v1776_v50  ;;  %2907 = vmatprep.mubr.msk.f32.mxu1 %vm3307_vm0, %v3306_v0 }
 0x2ed   : > { %2910 = vmatprep.subr.mxu1 %v3306_v0 }
 0x2ef   : > { %2908 = vmatmul.mubr.msk.f32.vlgmr.msra.gmra.mxu1 %vm1385_vm2, %v1772_v52 }
 0x2f0   : > { %2911 = vmatpush3.msra.mxu1 %v1777_v53  ;;  %2912 = vmatprep.mubr.msk.f32.mxu1 %vm3307_vm0, %v3306_v0 }
 0x2f1   : > { %2920 = vmatprep.subr.mxu1 %v3306_v0 }
 0x2f3   : > { %2913 = vmatmul.mubr.msk.f32.vlgmr.msra.gmra.mxu1 %vm1385_vm2, %v1773_v54 }
 0x2f4   : > { %2922 = vmatprep.mubr.msk.f32.mxu1 %vm3307_vm0, %v3306_v0 }
 0x3a7   : > { %v1848_v56 = vpop.f32.mrf.mxu1 }
 0x3a8   : > { %v2071_v57 = vsel %vm1385_vm2, %v1848_v56, -inf }
 0x3a9   : > { %2072 = vmax.xlane.f32.xlu0 %v2071_v57  ;;  %v2899_v58 = vpop.f32.mrf.mxu1 }
 0x3ab   : > { %v1921_v59 = vpop.f32.mrf.mxu1 }
 0x3ac   : > { %v2074_v60 = vsel %vm1385_vm2, %v1921_v59, -inf }
 0x3ad   : > { %2075 = vmax.xlane.f32.xlu1 %v2074_v60  ;;  %v2904_v61 = vpop.f32.mrf.mxu1 }
 0x3af   : > { %v1994_v16 = vpop.f32.mrf.mxu1 }
 0x3b0   : > { %v2077_v62 = vsel %vm1385_vm2, %v1994_v16, -inf }
 0x3b1   : > { %2078 = vmax.xlane.f32.xlu1 %v2077_v62  ;;  %v2909_v63 = vpop.f32.mrf.mxu1 }
 0x3b3   : > { %v2067_v1 = vpop.f32.mrf.mxu1 }
 0x3b4   : > { %v2080_v51 = vsel %vm1385_vm2, %v2067_v1, -inf }
 0x3b5   : > { %2081 = vmax.xlane.f32.xlu0 %v2080_v51  ;;  %v2914_v2 = vpop.f32.mrf.mxu1 }
 0x3c2   : > { %1391 = vrot.lane.b32.xlu1 %v588_v4, %s3309_s16 }
 0x3c6   : > { %1397 = vrot.lane.b32.xlu1 %v588_v4, %s3308_s7 }
 0x3cb   : > { %1394 = vrot.lane.b32.xlu0 %v588_v4, %s3310_s18  ;;  %s3209_s18 = scalar_lea.vmem %s2665_s3, 128 }
 0x3cc   : > { %p3210_p1 = scmp.ne.s32.totalorder %s2665_s3, %s3209_s18  ;;  %p3217_p8 = scmp.lt.s32.totalorder %s3215_s24, %s3209_s18 }
 0x3ce   : > { %p3211_p3 = pnand %p3210_p1, %p3489_p2  ;;  %p3218_p7 = por %p3217_p8, %p3216_p0 }
 0x3d0   : > { %p3212_p5 = pneg %p3211_p3 }
 0x3d2   : > { %p3219_p9 = pnand %p3218_p7, %p3212_p5 }
 0x432   : > { %v2073_v6 = vpop.xlane.xlu0 %2072 }
 0x433   : > { %v2083_v7 = vsub.f32 %v1848_v56, %v2073_v6 }
 0x435   : > { %v2087_v8 = vmul.f32 1.442695, %v2083_v7 }
 0x436   : > { %v2076_v9 = vpop.xlane.xlu1 %2075 }
 0x437   : > { %3061 = vpow2.f32 %v2087_v8  ;;  %v2084_v10 = vsub.f32 %v1921_v59, %v2076_v9 }
 0x439   : > { %v2089_v11 = vmul.f32 1.442695, %v2084_v10 }
 0x43a   : > { %v2079_v12 = vpop.xlane.xlu1 %2078 }
 0x43b   : > { %3063 = vpow2.f32 %v2089_v11  ;;  %v2085_v13 = vsub.f32 %v1994_v16, %v2079_v12 }
 0x43d   : > { %v2091_v14 = vmul.f32 1.442695, %v2085_v13 }
 0x43e   : > { %v1392_v15 = vpop.permute.xlu1 %1391  ;;  %v2082_v17 = vpop.xlane.xlu0 %2081 }
 0x43f   : > { %3065 = vpow2.f32 %v2091_v14  ;;  %v2086_v18 = vsub.f32 %v2067_v1, %v2082_v17 }
 0x441   : > { %v2093_v19 = vmul.f32 1.442695, %v2086_v18 }
 0x442   : > { %v1398_v20 = vpop.permute.xlu1 %1397  ;;  %v1395_v21 = vpop.permute.xlu0 %1394 }
 0x443   : > { %3067 = vpow2.f32 %v2093_v19  ;;  %v1416_v22 = vcombine.low %v1392_v15, %v1398_v20  ;;  %v1417_v23 = vcombine.high %v1392_v15, %v1398_v20  ;;  %v1400_v24 = vcombine.low %v588_v4, %v1395_v21 }
 0x444   : > { %v3678_v25 = vpop.eup %3061  ;;  %v1401_v26 = vcombine.high %v588_v4, %v1395_v21  ;;  %v2567_v21 = vld [vmem:[#allocation12 + $0x18] sm:$0xff] }
 0x445   : > { %v1424_v28 = vrot.slane %v1416_v22, %v3574_v27  ;;  %v1431_v29 = vrot.slane %v1417_v23, %v3574_v27  ;;  %v1408_v30 = vrot.slane %v1400_v24, %v3574_v27  ;;  %v2095_v31 = vsel %vm1385_vm2, %v3678_v25, 0.0 }
 0x446   : > { %v1415_v32 = vrot.slane %v1401_v26, %v3574_v27  ;;  %2096 = vadd.xlane.f32.xlu1 %v2095_v31 }
 0x447   : > { %v1432_v33 = vcombine.low %v1408_v30, %v1424_v28  ;;  %v1433_v34 = vcombine.high %v1408_v30, %v1424_v28 }
 0x448   : > { %v3064_v35 = vpop.eup %3063  ;;  %v1448_v36 = vcombine.low %v1415_v32, %v1431_v29  ;;  %v1449_v38 = vcombine.high %v1415_v32, %v1431_v29 }
 0x449   : > { %v1440_v39 = vrot.slane %v1432_v33, %v3579_v37  ;;  %v1447_v40 = vrot.slane %v1433_v34, %v3579_v37  ;;  %v2098_v41 = vsel %vm1385_vm2, %v3064_v35, 0.0 }
 0x44a   : > { %v1456_v42 = vrot.slane %v1448_v36, %v3579_v37  ;;  %v1463_v43 = vrot.slane %v1449_v38, %v3579_v37  ;;  %2099 = vadd.xlane.f32.xlu0 %v2098_v41 }
 0x44b   : > { %v1468_v44 = vcombine.low %v1440_v39, %v1447_v40  ;;  %v2804_v45 = vcombine.high %v1440_v39, %v1447_v40 }
 0x44c   : > { %v3066_v46 = vpop.eup %3065  ;;  %v1484_v47 = vcombine.low %v1456_v42, %v1463_v43  ;;  %v2805_v48 = vcombine.high %v1456_v42, %v1463_v43 }
 0x44d   : > { %v1475_v49 = vrot.slane %v1468_v44, %v3574_v27  ;;  %v1483_v50 = vrot.slane %v2804_v45, %v3574_v27  ;;  %v2101_v52 = vsel %vm1385_vm2, %v3066_v46, 0.0  ;;  %v2566_v44 = vld [vmem:[#allocation12 + $0x10] sm:$0xff]  ;;  %v2565_v45 = vld [vmem:[#allocation12 + $0x8] sm:$0xff] }
 0x44e   : > { %v1491_v53 = vrot.slane %v1484_v47, %v3574_v27  ;;  %v1499_v54 = vrot.slane %v2805_v48, %v3574_v27  ;;  %2102 = vadd.xlane.f32.xlu1 %v2101_v52 }
 0x44f   : > { %v1500_v5 = vcombine.low %v1475_v49, %v1483_v50  ;;  %v1501_v55 = vcombine.high %v1475_v49, %v1483_v50 }
 0x450   : > { %v3068_v56 = vpop.eup %3067  ;;  %v1516_v57 = vcombine.low %v1491_v53, %v1499_v54  ;;  %v1517_v58 = vcombine.high %v1491_v53, %v1499_v54 }
 0x451   : > { %v1508_v59 = vrot.slane %v1500_v5, %v3579_v37  ;;  %v1515_v60 = vrot.slane %v1501_v55, %v3579_v37  ;;  %v2104_v61 = vsel %vm1385_vm2, %v3068_v56, 0.0  ;;  %v2564_v5 = vld [vmem:[#allocation12] sm:$0xff] }
 0x452   : > { %v1524_v16 = vrot.slane %v1516_v57, %v3579_v37  ;;  %v1531_v62 = vrot.slane %v1517_v58, %v3579_v37  ;;  %2105 = vadd.xlane.f32.xlu0 %v2104_v61 }
 0x454   : > { %v1532_v63 = vcombine.low %v1508_v59, %v1524_v16  ;;  %v1533_v1 = vcombine.high %v1508_v59, %v1524_v16  ;;  %v1534_v51 = vcombine.low %v1515_v60, %v1531_v62  ;;  %v1535_v2 = vcombine.high %v1515_v60, %v1531_v62 }
 0x456   : > { %1536 = vst.msk [vmem:[#allocation3] sm:$0xff] %vm1385_vm2, %v1532_v63  ;;  %1537 = vst.msk [vmem:[#allocation3 + $0x8] sm:$0xff] %vm1385_vm2, %v1533_v1 }
 0x457   : > { %1538 = vst.msk [vmem:[#allocation3 + $0x10] sm:$0xff] %vm1385_vm2, %v1534_v51  ;;  %1539 = vst.msk [vmem:[#allocation3 + $0x18] sm:$0xff] %vm1385_vm2, %v1535_v2 }
 0x45d   : > { %v2115_v3 = vld [vmem:[#allocation3] sm:$0xff]  ;;  %v2116_v4 = vld [vmem:[#allocation3 + $0x8] sm:$0xff] }
 0x45e   : > { %2916 = vmatpush3.msra.mxu0 %v2115_v3  ;;  %2921 = vmatpush3.msra.mxu1 %v2116_v4  ;;  %v2117_v12 = vld [vmem:[#allocation3 + $0x10] sm:$0xff]  ;;  %v2118_v15 = vld [vmem:[#allocation3 + $0x18] sm:$0xff] }
 0x45f   : > { %2925 = vmatprep.subr.mxu0 %v3306_v0  ;;  %2930 = vmatprep.subr.mxu1 %v3306_v0 }
 0x4cf   : > { %v2097_v6 = vpop.xlane.xlu1 %2096 }
 0x4d0   : > { %3069 = vrcp.f32 %v2097_v6 }
 0x4d3   : > { %v2100_v7 = vpop.xlane.xlu0 %2099 }
 0x4d4   : > { %3071 = vrcp.f32 %v2100_v7 }
 0x4d7   : > { %v2103_v8 = vpop.xlane.xlu1 %2102 }
 0x4d8   : > { %3073 = vrcp.f32 %v2103_v8 }
 0x4db   : > { %v2106_v9 = vpop.xlane.xlu0 %2105 }
 0x4dc   : > { %3075 = vrcp.f32 %v2106_v9 }
 0x4dd   : > { %v3070_v10 = vpop.eup %3069 }
 0x4de   : > { %v2111_v11 = vmul.f32 %v3070_v10, %v3678_v25  ;;  %v2820_v10 = vld [vmem:[%s3800_s8] ss:$0 sm:$0xff] }
 0x4e0   : > { %2918 = vmatmul.mubr.msk.f32.vlgmr.msra.gmra.mxu0 %vm1385_vm2, %v2111_v11 }
 0x4e1   : > { %v3072_v13 = vpop.eup %3071  ;;  %2926 = vmatpush3.msra.mxu0 %v2117_v12  ;;  %2927 = vmatprep.mubr.msk.f32.mxu0 %vm3307_vm0, %v3306_v0 }
 0x4e2   : > { %v2112_v14 = vmul.f32 %v3072_v13, %v3064_v35  ;;  %2935 = vmatprep.subr.mxu0 %v3306_v0 }
 0x4e4   : > { %2923 = vmatmul.mubr.msk.f32.vlgmr.msra.gmra.mxu1 %vm1385_vm2, %v2112_v14 }
 0x4e5   : > { %v3074_v17 = vpop.eup %3073  ;;  %2931 = vmatpush3.msra.mxu1 %v2118_v15  ;;  %2932 = vmatprep.mubr.msk.f32.mxu1 %vm3307_vm0, %v3306_v0 }
 0x4e6   : > { %v2113_v18 = vmul.f32 %v3074_v17, %v3066_v46 }
 0x4e8   : > { %2928 = vmatmul.mubr.msk.f32.vlgmr.msra.gmra.mxu0 %vm1385_vm2, %v2113_v18 }
 0x4e9   : > { %v3076_v19 = vpop.eup %3075  ;;  %2943 = vmatprep.mubr.msk.f32.mxu0 %vm3307_vm0, %v3306_v0  ;;  %2936 = vmatpush3.msra.mxu0 %v2567_v21 }
 0x4ea   : > { %v2114_v20 = vmul.f32 %v3076_v19, %v3068_v56  ;;  %2937 = vmatprep.subr.mxu0 %v3306_v0 }
 0x4eb   : > { %2938 = vmatpush3.msra.mxu0 %v2566_v44 }
 0x4ec   : > { %2933 = vmatmul.mubr.msk.f32.vlgmr.msra.gmra.mxu1 %vm1385_vm2, %v2114_v20  ;;  %2939 = vmatprep.subr.mxu0 %v3306_v0 }
 0x4ed   : > { %2940 = vmatpush3.msra.mxu0 %v2565_v45 }
 0x4ee   : > { %2941 = vmatprep.subr.mxu0 %v3306_v0 }
 0x4ef   : > { %2942 = vmatpush3.msra.mxu0 %v2564_v5 }
 0x5a0   : > { %v2188_v22 = vpop.f32.mrf.mxu0 }
 0x5a2   : > { %v2919_v23 = vpop.f32.mrf.mxu0 }
 0x5a4   : > { %v2261_v24 = vpop.f32.mrf.mxu1 }
 0x5a6   : > { %v2924_v25 = vpop.f32.mrf.mxu1 }
 0x5a8   : > { %v2334_v26 = vpop.f32.mrf.mxu0 }
 0x5a9   : > { %v2411_v29 = vcombine.low %v2188_v22, %v2334_v26  ;;  %v2412_v30 = vcombine.high %v2188_v22, %v2334_v26 }
 0x5aa   : > { %v2929_v28 = vpop.f32.mrf.mxu0 }
 0x5ab   : > { %v2419_v35 = vrot.slane %v2411_v29, %v3574_v27  ;;  %v2426_v36 = vrot.slane %v2412_v30, %v3574_v27 }
 0x5ac   : > { %v2407_v31 = vpop.f32.mrf.mxu1 }
 0x5ad   : > { %v2427_v32 = vcombine.low %v2261_v24, %v2407_v31  ;;  %v2428_v33 = vcombine.high %v2261_v24, %v2407_v31 }
 0x5ae   : > { %v2934_v34 = vpop.f32.mrf.mxu1 }
 0x5af   : > { %v2435_v38 = vrot.slane %v2427_v32, %v3574_v27  ;;  %v2442_v39 = vrot.slane %v2428_v33, %v3574_v27 }
 0x5b1   : > { %v2443_v40 = vcombine.low %v2419_v35, %v2435_v38  ;;  %v2444_v41 = vcombine.high %v2419_v35, %v2435_v38  ;;  %v2459_v42 = vcombine.low %v2426_v36, %v2442_v39  ;;  %v2460_v43 = vcombine.high %v2426_v36, %v2442_v39 }
 0x5b3   : > { %v2451_v46 = vrot.slane %v2443_v40, %v3579_v37  ;;  %v2458_v47 = vrot.slane %v2444_v41, %v3579_v37  ;;  %v2467_v48 = vrot.slane %v2459_v42, %v3579_v37  ;;  %v2474_v49 = vrot.slane %v2460_v43, %v3579_v37 }
 0x5b5   : > { %v2479_v50 = vcombine.low %v2451_v46, %v2458_v47  ;;  %v2818_v52 = vcombine.high %v2451_v46, %v2458_v47  ;;  %v2495_v53 = vcombine.low %v2467_v48, %v2474_v49  ;;  %v2819_v54 = vcombine.high %v2467_v48, %v2474_v49 }
 0x5b7   : > { %v2486_v55 = vrot.slane %v2479_v50, %v3574_v27  ;;  %v2494_v56 = vrot.slane %v2818_v52, %v3574_v27  ;;  %v2502_v57 = vrot.slane %v2495_v53, %v3574_v27  ;;  %v2510_v58 = vrot.slane %v2819_v54, %v3574_v27 }
 0x5b9   : > { %v2512_v59 = vcombine.high %v2486_v55, %v2494_v56  ;;  %v2528_v60 = vcombine.high %v2502_v57, %v2510_v58  ;;  %v2511_v61 = vcombine.low %v2486_v55, %v2494_v56  ;;  %v2527_v16 = vcombine.low %v2502_v57, %v2510_v58 }
 0x5bb   : > { %v2526_v62 = vrot.slane %v2512_v59, %v3579_v37  ;;  %v2542_v63 = vrot.slane %v2528_v60, %v3579_v37  ;;  %v2519_v0 = vrot.slane %v2511_v61, %v3579_v37  ;;  %v2535_v1 = vrot.slane %v2527_v16, %v3579_v37 }
 0x5bd   : > { %v2545_v51 = vcombine.low %v2526_v62, %v2542_v63  ;;  %v2544_v2 = vcombine.high %v2519_v0, %v2535_v1  ;;  %v2543_v3 = vcombine.low %v2519_v0, %v2535_v1  ;;  %v2546_v27 = vcombine.high %v2526_v62, %v2542_v63 }
 0x5bf   : > { %2552 = vrot.lane.b32.xlu1 %v2545_v51, %s3313_s26  ;;  %2548 = vrot.lane.b32.xlu0 %v2544_v2, %s3314_s20 }
 0x5c3   : > { %2556 = vrot.lane.b32.xlu1 %v2546_v27, %s3315_s19 }
 0x631   : > { %v2553_v4 = vpop.permute.xlu1 %2552  ;;  %v2549_v6 = vpop.permute.xlu0 %2548 }
 0x632   : > { %v2559_v7 = vsel %vm1385_vm2, %v2543_v3, %v2549_v6 }
 0x633   : > { %v2561_v8 = vsel %vm2560_vm3, %v2559_v7, %v2553_v4 }
 0x635   : > { %v2557_v37 = vpop.permute.xlu1 %2556 }
 0x636   : > { %v2563_v9 = vsel %vm2562_vm4, %v2561_v8, %v2557_v37 }
 0x637   : > { %2944 = vmatmul.mubr.msk.f32.vlgmr.msra.gmra.mxu0 %vm436_vm1, %v2563_v9 }
 0x6f7   : > { %v2644_v11 = vpop.f32.mrf.mxu0 }
 0x6f8   : > { %v2645_v12 = vadd.f32 %v2820_v10, %v2644_v11 }
 0x6f9   : > { %v2945_v13 = vpop.f32.mrf.mxu0 }
 0x6fa   : > { %2648 = vst.msk [vmem:[%s419_s1] sm:$0xff] %vm436_vm1, %v2645_v12 }
 0x6fb   : > { %3222 = shalt.err (!%p3219_p9)
}
 0x6fc   : > { %s3223_s21 = scalar_lea.hbm %s3749_s17, 128  ;;  %s3227_s20 = scalar_lea.hbm %s3801_s9, 256 }
 0x6fd   : > { %p3224_p10 = scmp.ne.s32.totalorder %s3749_s17, %s3223_s21  ;;  %p3228_p13 = scmp.lt.s32.totalorder %s3749_s17, %s3801_s9 }
 0x6fe   : > { %p3229_p4 = scmp.lt.s32.totalorder %s3227_s20, %s3223_s21 }
 0x6ff   : > { %p3225_p12 = pnand %p3224_p10, %p3489_p2 }
 0x700   : > { %p3230_p11 = por %p3229_p4, %p3228_p13 }
 0x701   : > { %p3226_p6 = pneg %p3225_p12 }
 0x703   : > { %p3231_p1 = pnand %p3230_p11, %p3226_p6 }
 0x705   : > { %3234 = shalt.err (!%p3231_p1)
}
 0x706   : > { %2964 = dma.vmem_to_hbm [thread:$0]  (%p3489_p2), %s2665_s3, 128, %s3749_s17, %s2650_s27  }
 0x707 PF: > { %s2676_s25 = sand.u32 1, %s3277_s30   ;;  %p3822_p3 = scmp.ne.s32.totalorder %s3820_s29, 0 }
 0x708   : > { %p3823_p5 = scmp.ge.s32.totalorder %s3297_s14, 2  ;;  %s2677_s13 = scalar_lea.sflag [#allocation6], %s2676_s25 }
 0x70a   : > { %p2984_p0 = pnand %p3823_p5, %p3822_p3 }
 0x70c   : > { %p2985_p8 = pneg %p2984_p0 }
 0x70e   : > { %3272 = dma.done.wait (%p2985_p8), %s2677_s13, 128  }
 0x70f   : > { %3274 = vsyncadd (%p2985_p8), %s2677_s13, 4294967168  ;;  %s27_s14 = sadd.s32 1, %s3297_s14   ;;  %s3824_s12 = sld [smem:[#allocation18_spill]] }
 0x710   : > { %p24_p7 = scmp.ge.s32.totalorder %s27_s14, 4   ;;  %s3825_s13 = sld [smem:[#allocation19_spill]] }
 0x711   : > { %s3826_s30 = smov %s3281_s10  ;;  %s3827_s10 = smov %s3285_s11 }
 0x712   : > { %s3828_s11 = smov %s3494_s22  ;;  %26 = sbr.rel (!%p24_p7) target bundleno = 13 (0xd), region = 122 }
 0x717   :  { %2682 = vsyncpa [#allocation5], 1 }
 0x718   :  { %2684 = vsyncpa [#allocation5 + $0x1], 1 }
 0x719   :  { %2685 = vsyncpa [#allocation8], 1 }
 0x71a   :  { %2686 = vsyncpa [#allocation11], 1 }
 0x71b   :  { %2687 = vsyncpa [#allocation6], 1 }
 0x71c   :  { %2689 = vsyncpa [#allocation6 + $0x1], 1 }

// kernel: tpu_custom_call.1
= control target key start
LH: loop header
LB: loop body
LE: loop exit
PB: predicated region body
PF: predicated region fallthrough
CT: control target
= control target key end

     0   :  { %s3792_s0 = inlined_call_operand.hbm [shape: f32[2,8,32], index: 0, kind: input, shape index: {}]   ;;  %s3793_s1 = inlined_call_operand.hbm [shape: f32[32,32], index: 1, kind: input, shape index: {}]   ;;  %s3794_s2 = inlined_call_operand.hbm [shape: f32[32,32], index: 2, kind: input, shape index: {}]   ;;  %s3795_s3 = inlined_call_operand.hbm [shape: f32[32,32], index: 3, kind: input, shape index: {}]   ;;  %s3796_s4 = inlined_call_operand.vmem [shape: f32[1,32], index: 4, kind: input, shape index: {}]   ;;  %s3797_s5 = inlined_call_operand.vmem [shape: f32[1,32], index: 5, kind: input, shape index: {}]   ;;  %s3798_s6 = inlined_call_operand.vmem [shape: f32[1,32], index: 6, kind: input, shape index: {}]   ;;  %s3799_s7 = inlined_call_operand.hbm [shape: f32[32,32], index: 7, kind: input, shape index: {}]   ;;  %s3800_s8 = inlined_call_operand.vmem [shape: f32[1,32], index: 8, kind: input, shape index: {}]   ;;  %s3801_s9 = inlined_call_operand.hbm [shape: f32[2,8,32], index: 9, kind: output, shape index: {}]  }
   0x1   :  { %3804 = sst [smem:[#allocation20_spill]] %s3793_s1 }
   0x2   :  { %3805 = sst [smem:[#allocation21_spill]] %s3794_s2 }
   0x3   :  { %3806 = sst [smem:[#allocation22_spill]] %s3795_s3 }
   0x4   :  { %3807 = sst [smem:[#allocation23_spill]] %s3799_s7 }
   0x5   :  { %14 = vsyncpa [#allocation5], 0 }
   0x6   :  { %16 = vsyncpa [#allocation5 + $0x1], 0 }
   0x7   :  { %17 = vsyncpa [#allocation8], 0 }
   0x8   :  { %18 = vsyncpa [#allocation11], 0 }
   0x9   :  { %19 = vsyncpa [#allocation6], 0 }
   0xa   :  { %21 = vsyncpa [#allocation6 + $0x1], 0  ;;  %s3367_s30 = smov 0   ;;  %s3369_s10 = smov 0  }
   0xb   :  { %s3371_s11 = smov 0   ;;  %s3373_s12 = smov 0  }
   0xc   :  { %s3375_s13 = smov 0   ;;  %s3377_s14 = smov 0  }
   0xd LB: > { %3808 = sst [smem:[#allocation18_spill]] %s3293_s13  ;;  %s2783_s15 = sadd.s32 4294967295, %s3297_s14   ;;  %s3297_s14 = sphi %s3377_s14, %s27_s14   ;;  %s3293_s13 = sphi %s3375_s13, %s3825_s13   ;;  %s3289_s12 = sphi %s3373_s12, %s3824_s12   ;;  %s3285_s11 = sphi %s3371_s11, %s3828_s11   ;;  %s3281_s10 = sphi %s3369_s10, %s3827_s10   ;;  %s3277_s30 = sphi %s3367_s30, %s3826_s30  }
   0xe   : > { %p2785_p0 = scmp.ge.s32.totalorder %s3297_s14, 1  ;;  %p3401_p1 = scmp.eq.s32.totalorder %s2783_s15, 0 }
   0xf   : > { %p266_p2 = scmp.lt.s32.totalorder %s3297_s14, 3  ;;  %s3299_s18 = smov [#allocation7]  }
  0x10   : > { %s278_s19 = sshll.u32 %s3299_s18, 4  ;;  %s3300_s21 = smov [#allocation10]   ;;  %s279_s19 = int_to_ptr.vmem [resolvable:$true] %s278_s19 }
  0x11   : > { %p3406_p3 = pnand %p2785_p0, %p266_p2  ;;  %s304_s22 = sshll.u32 %s3300_s21, 4  ;;  %s305_s22 = int_to_ptr.vmem [resolvable:$true] %s304_s22 }
  0x12   : > { %s3301_s23 = smov [#allocation9]   ;;  %s3088_s25 = scalar_lea.vmem %s279_s19, 512 }
  0x13   : > { %p2966_p4 = pneg %p3406_p3  ;;  %s291_s24 = sshll.u32 %s3301_s23, 4  ;;  %s292_s24 = int_to_ptr.vmem [resolvable:$true] %s291_s24 }
  0x14   : > { %p3089_p8 = scmp.ne.s32.totalorder %s279_s19, %s3088_s25  ;;  %p3096_p11 = scmp.lt.s32.totalorder %s279_s19, %s279_s19 }
  0x15   : > { %p3415_p6 = pnand %p2966_p4, %p3401_p1  ;;  %p3097_p12 = scmp.lt.s32.totalorder %s3088_s25, %s3088_s25 }
  0x17   : > { %p3079_p7 = pneg %p3415_p6  ;;  %p3098_p13 = por %p3097_p12, %p3096_p11 }
  0x19   : > { %p3091_p9 = pnand %p3089_p8, %p3079_p7 }
  0x1b   : > { %p3092_p10 = pneg %p3091_p9 }
  0x1d   : > { %p3099_p0 = pnand %p3098_p13, %p3092_p10 }
  0x1f   : > { %3102 = shalt.err (!%p3099_p0)
}
  0x20   : > { %s3302_s26 = smov 128   ;;  %s3303_s27 = smov 8  }
  0x21   : > { %s3812_s1 = sld [smem:[#allocation20_spill]]  ;;  %s3114_s18 = scalar_lea.vmem %s305_s22, 512 }
  0x22   : > { %p3115_p2 = scmp.ne.s32.totalorder %s305_s22, %s3114_s18  ;;  %p3122_p9 = scmp.lt.s32.totalorder %s305_s22, %s305_s22 }
  0x23   : > { %p3123_p10 = scmp.lt.s32.totalorder %s3114_s18, %s3114_s18 }
  0x24   : > { %p3117_p4 = pnand %p3115_p2, %p3079_p7 }
  0x25   : > { %p3124_p11 = por %p3123_p10, %p3122_p9 }
  0x26   : > { %p3118_p8 = pneg %p3117_p4 }
  0x27   : > { %2969 = dma.hbm_to_vmem [thread:$0]  (!%p3415_p6), %s3812_s1, 512, %s279_s19, [#allocation8], %s3302_s26, %s3302_s26, %s3303_s27  }
  0x28   : > { %p3125_p12 = pnand %p3124_p11, %p3118_p8 }
  0x2a   : > { %3128 = shalt.err (!%p3125_p12)
}
  0x2b   : > { %s3813_s3 = sld [smem:[#allocation22_spill]]  ;;  %s3140_s19 = scalar_lea.vmem %s292_s24, 512 }
  0x2c   : > { %p3141_p13 = scmp.ne.s32.totalorder %s292_s24, %s3140_s19  ;;  %p3148_p4 = scmp.lt.s32.totalorder %s292_s24, %s292_s24 }
  0x2d   : > { %p3149_p8 = scmp.lt.s32.totalorder %s3140_s19, %s3140_s19 }
  0x2e   : > { %p3143_p0 = pnand %p3141_p13, %p3079_p7 }
  0x2f   : > { %p3150_p9 = por %p3149_p8, %p3148_p4 }
  0x30   : > { %p3144_p2 = pneg %p3143_p0 }
  0x31   : > { %2975 = dma.hbm_to_vmem [thread:$0]  (!%p3415_p6), %s3813_s3, 512, %s305_s22, [#allocation11], %s3302_s26, %s3302_s26, %s3303_s27  }
  0x32   : > { %p3151_p10 = pnand %p3150_p9, %p3144_p2 }
  0x34   : > { %3154 = shalt.err (!%p3151_p10)
}
  0x35   : > { %s3814_s2 = sld [smem:[#allocation21_spill]]  ;;  %s3304_s22 = smov [#allocation12]  }
  0x36   : > { %s326_s29 = sshll.u32 %s3304_s22, 4  ;;  %s327_s29 = int_to_ptr.vmem [resolvable:$true] %s326_s29 }
  0x37   : > { %s3166_s18 = scalar_lea.vmem %s327_s29, 512  ;;  %p3174_p0 = scmp.lt.s32.totalorder %s327_s29, %s327_s29 }
  0x38   : > { %p3167_p11 = scmp.ne.s32.totalorder %s327_s29, %s3166_s18  ;;  %p3175_p2 = scmp.lt.s32.totalorder %s3166_s18, %s3166_s18 }
  0x3a   : > { %p3169_p12 = pnand %p3167_p11, %p3079_p7  ;;  %p3176_p4 = por %p3175_p2, %p3174_p0 }
  0x3b   : > { %2972 = dma.hbm_to_vmem [thread:$0]  (!%p3415_p6), %s3814_s2, 512, %s292_s24, [#allocation8], %s3302_s26, %s3302_s26, %s3303_s27  }
  0x3c   : > { %p3170_p13 = pneg %p3169_p12 }
  0x3e   : > { %p3177_p8 = pnand %p3176_p4, %p3170_p13 }
  0x40   : > { %3180 = shalt.err (!%p3177_p8)
}
  0x41   : > { %s3815_s7 = sld [smem:[#allocation23_spill]]  ;;  %s2784_s20 = sadd.s32 4294967294, %s3297_s14  }
  0x42   : > { %s39_s23 = sadd.s32 1, %s3293_s13  ;;  %s46_s19 = sadd.s32 1, %s3285_s11 }
  0x43   : > { %p41_p7 = scmp.ge.s32.totalorder %s39_s23, 2  ;;  %p53_p9 = scmp.ne.s32.totalorder %s3285_s11, %s3281_s10 }
  0x44   : > { %p54_p10 = scmp.eq.s32.totalorder %s3297_s14, 0  ;;  %p59_p12 = scmp.ne.s32.totalorder %s3281_s10, %s3277_s30 }
  0x45   : > { %s3830_s23 = smov (%p41_p7, %s39_s23), 0  ;;  %p259_p4 = scmp.eq.s32.totalorder %s2784_s20, 1 }
  0x46   : > { %3816 = sst [smem:[#allocation19_spill]] %s3830_s23  ;;  %p3473_p11 = por %p54_p10, %p53_p9 }
  0x47   : > { %2978 = dma.hbm_to_vmem [thread:$0]  (!%p3415_p6), %s3815_s7, 512, %s327_s29, [#allocation11], %s3302_s26, %s3302_s26, %s3303_s27  }
  0x48   : > { %s43_s26 = ssub.s32 %s3293_s13, %s3830_s23  ;;  %p253_p6 = scmp.eq.s32.totalorder %s2783_s15, 1 }
  0x49   : > { %p44_p13 = scmp.eq.s32.totalorder %s43_s26, 0  ;;  %p3485_p0 = por %p3401_p1, %p59_p12 }
  0x4a   : > { %p3489_p2 = por %p253_p6, %p53_p9  ;;  %p3496_p8 = por %p259_p4, %p59_p12 }
  0x4b   : > { %s3494_s22 = scalar_select %p44_p13, %s3285_s11, %s46_s19  }
  0x4c   : > { %s3820_s29 = scalar_select %p3496_p8, 1, 0 }
  0x4d   : > { %p2991_p7 = scmp.lt.s32.totalorder %s3297_s14, 2  ;;  %s343_s18 = sand.u32 1, %s3285_s11  }
  0x4e   : > { %s2792_s15 = sshll.u32 %s3293_s13, 7  ;;  %s2791_s24 = sshll.u32 %s343_s18, 3 }
  0x4f   : > { %s352_s1 = scalar_lea.hbm %s3792_s0, %s2792_s15  ;;  %s347_s2 = scalar_lea.vmem [#allocation4], %s2791_s24 }
  0x50   : > { %s354_s3 = sshll.u32 %s347_s2, 4  ;;  %p3508_p9 = pnand %p2991_p7, %p3473_p11  ;;  %s355_s3 = int_to_ptr.vmem [resolvable:$true] %s354_s3 }
  0x51   : > { %s344_s20 = scalar_lea.sflag [#allocation5], %s343_s18  ;;  %s3194_s19 = scalar_lea.vmem %s355_s3, 128 }
  0x52   : > { %p3183_p10 = pneg %p3508_p9  ;;  %p3195_p12 = scmp.ne.s32.totalorder %s355_s3, %s3194_s19 }
  0x53   : > { %s3305_s23 = smov [#allocation4]  }
  0x54   : > { %p3197_p6 = pnand %p3195_p12, %p3183_p10  ;;  %s3199_s13 = sshll.u32 %s3305_s23, 4  ;;  %s3200_s13 = int_to_ptr.vmem [resolvable:$false] %s3199_s13 }
  0x55   : > { %s3201_s15 = scalar_lea.vmem %s3200_s13, 256  ;;  %p3202_p4 = scmp.lt.s32.totalorder %s355_s3, %s3200_s13 }
  0x56   : > { %p3198_p13 = pneg %p3197_p6  ;;  %p3203_p5 = scmp.lt.s32.totalorder %s3201_s15, %s3194_s19 }
  0x58   : > { %p3204_p8 = por %p3203_p5, %p3202_p4 }
  0x5a   : > { %p3205_p11 = pnand %p3204_p8, %p3198_p13 }
  0x5c   : > { %3208 = shalt.err (!%p3205_p11)
}
  0x5d   : > { %2982 = dma.hbm_to_vmem [thread:$0]  (!%p3508_p9), %s352_s1, 128, %s355_s3, %s344_s20  }
  0x5e   : > { %363 = sbr.rel (%p3406_p3) target bundleno = 1799 (0x707), region = 56  ;;  %s3519_s2 = sand.u32 (!%p3406_p3), 1, %s3281_s10  }
  0x5f   : > { %s2794_s23 = sshll.u32 (!%p3406_p3), %s3519_s2, 3  ;;  %s366_s25 = scalar_lea.sflag (!%p3406_p3), [#allocation5], %s3519_s2 }
  0x60   : > { %s369_s13 = scalar_lea.vmem (!%p3406_p3), [#allocation4], %s2794_s23 }
  0x63   : > { %3260 = dma.done.wait (%p3485_p0), %s366_s25, 128  }
  0x64   : > { %3262 = vsyncadd (%p3485_p0), %s366_s25, 4294967168 }
  0x65   : > { %3264 = dma.done.wait (%p3401_p1), [#allocation8], 1024  }
  0x66   : > { %3266 = vsyncadd (%p3401_p1), [#allocation8], 4294966272 }
  0x67   : > { %3268 = dma.done.wait (%p3401_p1), [#allocation11], 1024  }
  0x68   : > { %3270 = vsyncadd (%p3401_p1), [#allocation11], 4294966272  ;;  %v3306_v0 = vmov 0.0   ;;  %vm3307_vm0 = vmmov 0   ;;  %v428_v1 = vld [vmem:[#allocation9 + $0x18] sm:$0xff]  ;;  %v427_v2 = vld [vmem:[#allocation9 + $0x10] sm:$0xff]  ;;  %v606_v20 = vlaneseq }
  0x69   : > { %2862 = vmatprep.subr.mxu0 %v3306_v0  ;;  %2870 = vmatprep.mubr.msk.f32.mxu0 %vm3307_vm0, %v3306_v0  ;;  %v426_v3 = vld [vmem:[#allocation9 + $0x8] sm:$0xff]  ;;  %v425_v4 = vld [vmem:[#allocation9] sm:$0xff]  ;;  %v3545_v5 = vld [vmem:[%s369_s13] sm:$0xff]  ;;  %vm436_vm1 = vcmask 261120   ;;  %s3308_s7 = smov 104   ;;  %s3309_s16 = smov 120  }
  0x6a   : > { %2873 = vmatprep.subr.mxu1 %v3306_v0  ;;  %2881 = vmatprep.mubr.msk.f32.mxu1 %vm3307_vm0, %v3306_v0  ;;  %v1546_v6 = vld [vmem:[#allocation7 + $0x18] sm:$0xff]  ;;  %v1545_v7 = vld [vmem:[#allocation7 + $0x10] sm:$0xff]  ;;  %v1544_v8 = vld [vmem:[#allocation7 + $0x8] sm:$0xff]  ;;  %s3310_s18 = smov 112   ;;  %v3311_v18 = vmov 1983009808  }
  0x6b   : > { %2863 = vmatpush3.msra.mxu0 %v428_v1  ;;  %v1543_v9 = vld [vmem:[#allocation7] sm:$0xff]  ;;  %v2800_v10 = vld [vmem:[%s3797_s5] ss:$0 sm:$0xff]  ;;  %v604_v19 = vunpack.c.l.s4 %v3311_v18  ;;  %v607_v22 = vshrl.u32 %v606_v20, 7  ;;  %v3312_v23 = vmov 1934713408  }
  0x6c   : > { %2864 = vmatprep.subr.mxu0 %v3306_v0  ;;  %v2806_v14 = vld [vmem:[%s3796_s4] ss:$0 sm:$0xff]  ;;  %v636_v24 = vunpack.c.l.s4 %v3312_v23  ;;  %vm1385_vm2 = vcmask 64512   ;;  %s3313_s26 = smov 16   ;;  %s3314_s20 = smov 8   ;;  %vm2560_vm3 = vcmask 130048  }
  0x6d   : > { %2865 = vmatpush3.msra.mxu0 %v427_v2  ;;  %v605_v21 = vunpack.c.0.s8 %v604_v19  ;;  %s3315_s19 = smov 24   ;;  %vm2562_vm4 = vcmask 195584   ;;  %s2823_s13 = sshll.u32 %s3289_s12, 7 }
  0x6e   : > { %2866 = vmatprep.subr.mxu0 %v3306_v0  ;;  %v637_v29 = vunpack.c.0.s8 %v636_v24  ;;  %s419_s1 = scalar_lea.vmem [#allocation13], %s2794_s23  ;;  %s3749_s17 = scalar_lea.hbm %s3801_s9, %s2823_s13 }
  0x6f   : > { %2867 = vmatpush3.msra.mxu0 %v426_v3  ;;  %v3574_v27 = vsub.s32 %v605_v21, %v607_v22  ;;  %s2664_s3 = sshll.u32 %s419_s1, 4  ;;  %s2650_s27 = scalar_lea.sflag [#allocation6], %s3519_s2  ;;  %s2665_s3 = int_to_ptr.vmem [resolvable:$true] %s2664_s3 }
  0x70   : > { %2868 = vmatprep.subr.mxu0 %v3306_v0  ;;  %v3579_v37 = vsub.s32 %v637_v29, %v607_v22  ;;  %s3316_s12 = smov [#allocation13]  }
  0x71   : > { %2869 = vmatpush3.msra.mxu0 %v425_v4  ;;  %s3213_s23 = sshll.u32 %s3316_s12, 4  ;;  %s3214_s23 = int_to_ptr.vmem [resolvable:$false] %s3213_s23 }
  0x72   : > { %2871 = vmatmul.mubr.msk.f32.vlgmr.msra.gmra.mxu0 %vm436_vm1, %v3545_v5  ;;  %2884 = vmatprep.subr.mxu0 %v3306_v0  ;;  %s3215_s24 = scalar_lea.vmem %s3214_s23, 256  ;;  %p3216_p0 = scmp.lt.s32.totalorder %s2665_s3, %s3214_s23 }
  0x73   : > { %2885 = vmatpush3.msra.mxu0 %v1546_v6  ;;  %2892 = vmatprep.mubr.msk.f32.mxu0 %vm3307_vm0, %v3306_v0 }
  0x74   : > { %2886 = vmatprep.subr.mxu0 %v3306_v0 }
  0x75   : > { %2887 = vmatpush3.msra.mxu0 %v1545_v7 }
  0x76   : > { %2888 = vmatprep.subr.mxu0 %v3306_v0 }
  0x77   : > { %2889 = vmatpush3.msra.mxu0 %v1544_v8 }
  0x78   : > { %2890 = vmatprep.subr.mxu0 %v3306_v0 }
  0x79   : > { %2891 = vmatpush3.msra.mxu0 %v1543_v9 }
  0x7a   : > { %2893 = vmatmul.mubr.msk.f32.vlgmr.msra.gmra.mxu0 %vm436_vm1, %v3545_v5  ;;  %2915 = vmatprep.subr.mxu0 %v3306_v0 }
  0x7b   : > { %2917 = vmatprep.mubr.msk.f32.mxu0 %vm3307_vm0, %v3306_v0 }
 0x132   : > { %v506_v11 = vpop.f32.mrf.mxu0 }
 0x133   : > { %v507_v12 = vadd.f32 %v2800_v10, %v506_v11 }
 0x134   : > { %v2872_v13 = vpop.f32.mrf.mxu0 }
 0x135   : > { %598 = vrot.lane.b32.xlu1 %v507_v12, %s3308_s7  ;;  %592 = vrot.lane.b32.xlu0 %v507_v12, %s3309_s16 }
 0x139   : > { %595 = vrot.lane.b32.xlu0 %v507_v12, %s3310_s18 }
 0x13a   : > { %v1624_v15 = vpop.f32.mrf.mxu0 }
 0x13b   : > { %v3570_v16 = vadd.f32 %v2806_v14, %v1624_v15 }
 0x13c   : > { %v2894_v17 = vpop.f32.mrf.mxu0 }
 0x13d   : > { %1629 = vrot.lane.b32.xlu1 %v3570_v16, %s3309_s16 }
 0x1a7   : > { %v599_v25 = vpop.permute.xlu1 %598  ;;  %v593_v26 = vpop.permute.xlu0 %592 }
 0x1a8   : > { %v617_v28 = vcombine.low %v593_v26, %v599_v25  ;;  %v618_v31 = vcombine.high %v593_v26, %v599_v25 }
 0x1aa   : > { %v625_v34 = vrot.slane %v617_v28, %v3574_v27  ;;  %v632_v38 = vrot.slane %v618_v31, %v3574_v27 }
 0x1ab   : > { %v596_v30 = vpop.permute.xlu0 %595 }
 0x1ac   : > { %v601_v32 = vcombine.low %v507_v12, %v596_v30  ;;  %v602_v33 = vcombine.high %v507_v12, %v596_v30 }
 0x1ae   : > { %v609_v35 = vrot.slane %v601_v32, %v3574_v27  ;;  %v616_v36 = vrot.slane %v602_v33, %v3574_v27 }
 0x1af   : > { %v3594_v51 = vpop.permute.xlu1 %1629 }
 0x1b0   : > { %v634_v39 = vcombine.high %v609_v35, %v625_v34  ;;  %v633_v40 = vcombine.low %v609_v35, %v625_v34  ;;  %v649_v43 = vcombine.low %v616_v36, %v632_v38  ;;  %v650_v46 = vcombine.high %v616_v36, %v632_v38 }
 0x1b2   : > { %v648_v41 = vrot.slane %v634_v39, %v3579_v37  ;;  %v641_v42 = vrot.slane %v633_v40, %v3579_v37  ;;  %v657_v45 = vrot.slane %v649_v43, %v3579_v37  ;;  %v664_v48 = vrot.slane %v650_v46, %v3579_v37  ;;  %v511_v43 = vld [vmem:[#allocation10 + $0x8] sm:$0xff] }
 0x1b4   : > { %733 = vxpose.xlu0.b32.start.end [1/1] (short) (narrow) %v648_v41, 8  ;;  %669 = vxpose.xlu1.b32.start.end [1/1] (short) (narrow) %v641_v42, 8  ;;  %v665_v44 = vcombine.high %v641_v42, %v3306_v0  ;;  %v666_v47 = vcombine.high %v648_v41, %v3306_v0  ;;  %v667_v49 = vcombine.high %v657_v45, %v3306_v0  ;;  %v513_v41 = vld [vmem:[#allocation10 + $0x18] sm:$0xff]  ;;  %v512_v42 = vld [vmem:[#allocation10 + $0x10] sm:$0xff] }
 0x1b5   : > { %v668_v50 = vcombine.high %v664_v48, %v3306_v0  ;;  %2874 = vmatpush3.msra.mxu1 %v513_v41 }
 0x1b6   : > { %2875 = vmatprep.subr.mxu1 %v3306_v0 }
 0x1b7   : > { %2876 = vmatpush3.msra.mxu1 %v512_v42 }
 0x1b8   : > { %701 = vxpose.xlu0.b32.start.end [1/1] (short) (narrow) %v665_v44, 8  ;;  %797 = vxpose.xlu1.b32.start.end [1/1] (short) (narrow) %v657_v45, 8  ;;  %v510_v44 = vld [vmem:[#allocation10] sm:$0xff] }
 0x1b9   : > { %2877 = vmatprep.subr.mxu1 %v3306_v0 }
 0x1ba   : > { %2878 = vmatpush3.msra.mxu1 %v511_v43 }
 0x1bb   : > { %2879 = vmatprep.subr.mxu1 %v3306_v0 }
 0x1bc   : > { %765 = vxpose.xlu0.b32.start.end [1/1] (short) (narrow) %v666_v47, 8  ;;  %861 = vxpose.xlu1.b32.start.end [1/1] (short) (narrow) %v664_v48, 8 }
 0x1bd   : > { %2880 = vmatpush3.msra.mxu1 %v510_v44 }
 0x1be   : > { %2882 = vmatmul.mubr.msk.f32.vlgmr.msra.gmra.mxu1 %vm436_vm1, %v3545_v5  ;;  %2895 = vmatprep.subr.mxu1 %v3306_v0 }
 0x1bf   : > { %2897 = vmatprep.mubr.msk.f32.mxu1 %vm3307_vm0, %v3306_v0 }
 0x1c0   : > { %829 = vxpose.xlu0.b32.start.end [1/1] (short) (narrow) %v667_v49, 8 }
 0x1c4   : > { %893 = vxpose.xlu0.b32.start.end [1/1] (short) (narrow) %v668_v50, 8 }
 0x1da   : > { %1635 = vrot.lane.b32.xlu1 %v3570_v16, %s3308_s7 }
 0x1ed   : > { %1632 = vrot.lane.b32.xlu0 %v3570_v16, %s3310_s18 }
 0x230   : > { %v749_v52 = vpop.trf.xlu0  ;;  %v685_v53 = vpop.trf.xlu1 }
 0x231   : > { %v925_v60 = vcombine.low %v685_v53, %v749_v52  ;;  %v926_v10 = vcombine.high %v685_v53, %v749_v52 }
 0x233   : > { %v933_v1 = vrot.slane %v925_v60, %v3574_v27  ;;  %v940_v20 = vrot.slane %v926_v10, %v3574_v27 }
 0x234   : > { %v717_v54 = vpop.trf.xlu0  ;;  %v813_v55 = vpop.trf.xlu1 }
 0x238   : > { %v781_v56 = vpop.trf.xlu0  ;;  %v877_v59 = vpop.trf.xlu1 }
 0x239   : > { %v941_v57 = vcombine.low %v717_v54, %v781_v56  ;;  %v957_v62 = vcombine.low %v813_v55, %v877_v59  ;;  %v942_v4 = vcombine.high %v717_v54, %v781_v56  ;;  %v958_v7 = vcombine.high %v813_v55, %v877_v59 }
 0x23b   : > { %v949_v61 = vrot.slane %v941_v57, %v3574_v27  ;;  %v965_v8 = vrot.slane %v957_v62, %v3574_v27  ;;  %v956_v14 = vrot.slane %v942_v4, %v3574_v27  ;;  %v972_v15 = vrot.slane %v958_v7, %v3574_v27 }
 0x23c   : > { %v845_v58 = vpop.trf.xlu0 }
 0x23d   : > { %v989_v6 = vcombine.low %v933_v1, %v949_v61  ;;  %v990_v19 = vcombine.high %v933_v1, %v949_v61  ;;  %v1005_v26 = vcombine.low %v940_v20, %v956_v14  ;;  %v1006_v33 = vcombine.high %v940_v20, %v956_v14 }
 0x23f   : > { %v997_v17 = vrot.slane %v989_v6, %v3579_v37  ;;  %v1004_v25 = vrot.slane %v990_v19, %v3579_v37  ;;  %v1013_v32 = vrot.slane %v1005_v26, %v3579_v37  ;;  %v1020_v38 = vrot.slane %v1006_v33, %v3579_v37 }
 0x240   : > { %v909_v63 = vpop.trf.xlu0 }
 0x241   : > { %v973_v2 = vcombine.low %v845_v58, %v909_v63  ;;  %v974_v3 = vcombine.high %v845_v58, %v909_v63 }
 0x243   : > { %v981_v9 = vrot.slane %v973_v2, %v3574_v27  ;;  %v988_v11 = vrot.slane %v974_v3, %v3574_v27 }
 0x245   : > { %v1021_v12 = vcombine.low %v965_v8, %v981_v9  ;;  %v1022_v13 = vcombine.high %v965_v8, %v981_v9  ;;  %v1037_v24 = vcombine.low %v972_v15, %v988_v11  ;;  %v1038_v31 = vcombine.high %v972_v15, %v988_v11 }
 0x247   : > { %v1029_v18 = vrot.slane %v1021_v12, %v3579_v37  ;;  %v1036_v23 = vrot.slane %v1022_v13, %v3579_v37  ;;  %v1045_v30 = vrot.slane %v1037_v24, %v3579_v37  ;;  %v1052_v36 = vrot.slane %v1038_v31, %v3579_v37 }
 0x249   : > { %v1054_v21 = vcombine.high %v997_v17, %v1029_v18  ;;  %v1053_v22 = vcombine.low %v997_v17, %v1029_v18  ;;  %v1055_v28 = vcombine.low %v1004_v25, %v1036_v23  ;;  %v1056_v29 = vcombine.high %v1004_v25, %v1036_v23 }
 0x24a   : > { %v1057_v34 = vcombine.low %v1013_v32, %v1045_v30  ;;  %v1058_v35 = vcombine.high %v1013_v32, %v1045_v30  ;;  %v1059_v39 = vcombine.low %v1020_v38, %v1052_v36  ;;  %v1060_v40 = vcombine.high %v1020_v38, %v1052_v36 }
 0x24b   : > { %1093 = vxpose.xlu0.b32.start.end [1/1] (short) (narrow) %v1054_v21, 8  ;;  %1061 = vxpose.xlu1.b32.start.end [1/1] (short) (narrow) %v1053_v22, 8 }
 0x24c   : > { %v1636_v46 = vpop.permute.xlu1 %1635 }
 0x24d   : > { %v1654_v49 = vcombine.low %v3594_v51, %v1636_v46  ;;  %v1655_v50 = vcombine.high %v3594_v51, %v1636_v46 }
 0x24f   : > { %1125 = vxpose.xlu0.b32.start.end [1/1] (short) (narrow) %v1055_v28, 8  ;;  %1157 = vxpose.xlu1.b32.start.end [1/1] (short) (narrow) %v1056_v29, 8  ;;  %v1662_v55 = vrot.slane %v1654_v49, %v3574_v27  ;;  %v1669_v56 = vrot.slane %v1655_v50, %v3574_v27 }
 0x253   : > { %1189 = vxpose.xlu0.b32.start.end [1/1] (short) (narrow) %v1057_v34, 8  ;;  %1221 = vxpose.xlu1.b32.start.end [1/1] (short) (narrow) %v1058_v35, 8 }
 0x257   : > { %1253 = vxpose.xlu0.b32.start.end [1/1] (short) (narrow) %v1059_v39, 8  ;;  %1285 = vxpose.xlu1.b32.start.end [1/1] (short) (narrow) %v1060_v40, 8 }
 0x25f   : > { %v1633_v45 = vpop.permute.xlu0 %1632 }
 0x260   : > { %v1638_v47 = vcombine.low %v3570_v16, %v1633_v45  ;;  %v1639_v48 = vcombine.high %v3570_v16, %v1633_v45 }
 0x262   : > { %v1646_v54 = vrot.slane %v1638_v47, %v3574_v27  ;;  %v1653_v5 = vrot.slane %v1639_v48, %v3574_v27 }
 0x264   : > { %v1670_v59 = vcombine.low %v1646_v54, %v1662_v55  ;;  %v1671_v60 = vcombine.high %v1646_v54, %v1662_v55  ;;  %v1686_v61 = vcombine.low %v1653_v5, %v1669_v56  ;;  %v1687_v16 = vcombine.high %v1653_v5, %v1669_v56 }
 0x266   : > { %v1678_v2 = vrot.slane %v1670_v59, %v3579_v37  ;;  %v1685_v3 = vrot.slane %v1671_v60, %v3579_v37  ;;  %v1694_v4 = vrot.slane %v1686_v61, %v3579_v37  ;;  %v1701_v6 = vrot.slane %v1687_v16, %v3579_v37 }
 0x268   : > { %v1706_v13 = vcombine.low %v1678_v2, %v1685_v3  ;;  %v2808_v14 = vcombine.high %v1678_v2, %v1685_v3  ;;  %v1722_v15 = vcombine.low %v1694_v4, %v1701_v6  ;;  %v2809_v17 = vcombine.high %v1694_v4, %v1701_v6  ;;  %v2802_v3 = vld [vmem:[%s3798_s6] ss:$0 sm:$0xff] }
 0x26a   : > { %v1713_v24 = vrot.slane %v1706_v13, %v3574_v27  ;;  %v1721_v25 = vrot.slane %v2808_v14, %v3574_v27  ;;  %v1729_v26 = vrot.slane %v1722_v15, %v3574_v27  ;;  %v1737_v28 = vrot.slane %v2809_v17, %v3574_v27 }
 0x26c   : > { %v1738_v38 = vcombine.low %v1713_v24, %v1721_v25  ;;  %v1754_v39 = vcombine.low %v1729_v26, %v1737_v28  ;;  %v1739_v42 = vcombine.high %v1713_v24, %v1721_v25  ;;  %v1755_v43 = vcombine.high %v1729_v26, %v1737_v28 }
 0x26e   : > { %v1746_v40 = vrot.slane %v1738_v38, %v3579_v37  ;;  %v1762_v41 = vrot.slane %v1754_v39, %v3579_v37  ;;  %v1753_v48 = vrot.slane %v1739_v42, %v3579_v37  ;;  %v1769_v49 = vrot.slane %v1755_v43, %v3579_v37 }
 0x270   : > { %v1770_v45 = vcombine.low %v1746_v40, %v1762_v41  ;;  %v1771_v47 = vcombine.high %v1746_v40, %v1762_v41  ;;  %v1773_v54 = vcombine.high %v1753_v48, %v1769_v49 }
 0x27e   : > { %v587_v5 = vpop.f32.mrf.mxu1 }
 0x27f   : > { %v588_v4 = vadd.f32 %v2802_v3, %v587_v5 }
 0x280   : > { %v2883_v55 = vpop.f32.mrf.mxu1 }
 0x2c7   : > { %v1109_v52 = vpop.trf.xlu0  ;;  %v1077_v53 = vpop.trf.xlu1 }
 0x2cb   : > { %v1141_v57 = vpop.trf.xlu0  ;;  %v1173_v58 = vpop.trf.xlu1 }
 0x2cc   : > { %v1317_v62 = vcombine.low %v1077_v53, %v1141_v57  ;;  %v1325_v63 = vcombine.low %v1109_v52, %v1173_v58  ;;  %v1772_v52 = vcombine.low %v1753_v48, %v1769_v49 }
 0x2ce   : > { %v1324_v7 = vrot.slane %v1317_v62, %v3574_v27  ;;  %v1332_v8 = vrot.slane %v1325_v63, %v3574_v27 }
 0x2cf   : > { %v1205_v1 = vpop.trf.xlu0  ;;  %v1237_v51 = vpop.trf.xlu1 }
 0x2d0   : > { %v1349_v18 = vcombine.low %v1324_v7, %v1332_v8  ;;  %v1350_v19 = vcombine.high %v1324_v7, %v1332_v8 }
 0x2d2   : > { %v1357_v29 = vrot.slane %v1349_v18, %v3579_v37  ;;  %v1364_v30 = vrot.slane %v1350_v19, %v3579_v37 }
 0x2d3   : > { %v1269_v9 = vpop.trf.xlu0  ;;  %v1301_v10 = vpop.trf.xlu1 }
 0x2d4   : > { %v1333_v11 = vcombine.low %v1205_v1, %v1269_v9  ;;  %v1341_v12 = vcombine.low %v1237_v51, %v1301_v10 }
 0x2d6   : > { %v1340_v20 = vrot.slane %v1333_v11, %v3574_v27  ;;  %v1348_v21 = vrot.slane %v1341_v12, %v3574_v27 }
 0x2d8   : > { %v1365_v22 = vcombine.low %v1340_v20, %v1348_v21  ;;  %v1366_v23 = vcombine.high %v1340_v20, %v1348_v21 }
 0x2da   : > { %v1373_v31 = vrot.slane %v1365_v22, %v3579_v37  ;;  %v1380_v32 = vrot.slane %v1366_v23, %v3579_v37 }
 0x2dc   : > { %v1381_v33 = vcombine.low %v1357_v29, %v1373_v31  ;;  %v1382_v34 = vcombine.high %v1357_v29, %v1373_v31  ;;  %v1383_v35 = vcombine.low %v1364_v30, %v1380_v32  ;;  %v1384_v36 = vcombine.high %v1364_v30, %v1380_v32 }
 0x2de   : > { %1386 = vst.msk [vmem:[#allocation2] sm:$0xff] %vm1385_vm2, %v1381_v33  ;;  %1387 = vst.msk [vmem:[#allocation2 + $0x8] sm:$0xff] %vm1385_vm2, %v1382_v34 }
 0x2df   : > { %1388 = vst.msk [vmem:[#allocation2 + $0x10] sm:$0xff] %vm1385_vm2, %v1383_v35  ;;  %1389 = vst.msk [vmem:[#allocation2 + $0x18] sm:$0xff] %vm1385_vm2, %v1384_v36 }
 0x2e5   : > { %v1774_v44 = vld [vmem:[#allocation2] sm:$0xff]  ;;  %v1775_v46 = vld [vmem:[#allocation2 + $0x8] sm:$0xff] }
 0x2e6   : > { %2896 = vmatpush3.msra.mxu1 %v1774_v44  ;;  %v1776_v50 = vld [vmem:[#allocation2 + $0x10] sm:$0xff]  ;;  %v1777_v53 = vld [vmem:[#allocation2 + $0x18] sm:$0xff] }
 0x2e7   : > { %2898 = vmatmul.mubr.msk.f32.vlgmr.msra.gmra.mxu1 %vm1385_vm2, %v1770_v45  ;;  %2900 = vmatprep.subr.mxu1 %v3306_v0 }
 0x2e8   : > { %2901 = vmatpush3.msra.mxu1 %v1775_v46  ;;  %2902 = vmatprep.mubr.msk.f32.mxu1 %vm3307_vm0, %v3306_v0 }
 0x2e9   : > { %2905 = vmatprep.subr.mxu1 %v3306_v0 }
 0x2eb   : > { %2903 = vmatmul.mubr.msk.f32.vlgmr.msra.gmra.mxu1 %vm1385_vm2, %v1771_v47 }
 0x2ec   : > { %2906 = vmatpush3.msra.mxu1 %v1776_v50  ;;  %2907 = vmatprep.mubr.msk.f32.mxu1 %vm3307_vm0, %v3306_v0 }
 0x2ed   : > { %2910 = vmatprep.subr.mxu1 %v3306_v0 }
 0x2ef   : > { %2908 = vmatmul.mubr.msk.f32.vlgmr.msra.gmra.mxu1 %vm1385_vm2, %v1772_v52 }
 0x2f0   : > { %2911 = vmatpush3.msra.mxu1 %v1777_v53  ;;  %2912 = vmatprep.mubr.msk.f32.mxu1 %vm3307_vm0, %v3306_v0 }
 0x2f1   : > { %2920 = vmatprep.subr.mxu1 %v3306_v0 }
 0x2f3   : > { %2913 = vmatmul.mubr.msk.f32.vlgmr.msra.gmra.mxu1 %vm1385_vm2, %v1773_v54 }
 0x2f4   : > { %2922 = vmatprep.mubr.msk.f32.mxu1 %vm3307_vm0, %v3306_v0 }
 0x3a7   : > { %v1848_v56 = vpop.f32.mrf.mxu1 }
 0x3a8   : > { %v2071_v57 = vsel %vm1385_vm2, %v1848_v56, -inf }
 0x3a9   : > { %2072 = vmax.xlane.f32.xlu0 %v2071_v57  ;;  %v2899_v58 = vpop.f32.mrf.mxu1 }
 0x3ab   : > { %v1921_v59 = vpop.f32.mrf.mxu1 }
 0x3ac   : > { %v2074_v60 = vsel %vm1385_vm2, %v1921_v59, -inf }
 0x3ad   : > { %2075 = vmax.xlane.f32.xlu1 %v2074_v60  ;;  %v2904_v61 = vpop.f32.mrf.mxu1 }
 0x3af   : > { %v1994_v16 = vpop.f32.mrf.mxu1 }
 0x3b0   : > { %v2077_v62 = vsel %vm1385_vm2, %v1994_v16, -inf }
 0x3b1   : > { %2078 = vmax.xlane.f32.xlu1 %v2077_v62  ;;  %v2909_v63 = vpop.f32.mrf.mxu1 }
 0x3b3   : > { %v2067_v1 = vpop.f32.mrf.mxu1 }
 0x3b4   : > { %v2080_v51 = vsel %vm1385_vm2, %v2067_v1, -inf }
 0x3b5   : > { %2081 = vmax.xlane.f32.xlu0 %v2080_v51  ;;  %v2914_v2 = vpop.f32.mrf.mxu1 }
 0x3c2   : > { %1391 = vrot.lane.b32.xlu1 %v588_v4, %s3309_s16 }
 0x3c6   : > { %1397 = vrot.lane.b32.xlu1 %v588_v4, %s3308_s7 }
 0x3cb   : > { %1394 = vrot.lane.b32.xlu0 %v588_v4, %s3310_s18  ;;  %s3209_s18 = scalar_lea.vmem %s2665_s3, 128 }
 0x3cc   : > { %p3210_p1 = scmp.ne.s32.totalorder %s2665_s3, %s3209_s18  ;;  %p3217_p8 = scmp.lt.s32.totalorder %s3215_s24, %s3209_s18 }
 0x3ce   : > { %p3211_p3 = pnand %p3210_p1, %p3489_p2  ;;  %p3218_p7 = por %p3217_p8, %p3216_p0 }
 0x3d0   : > { %p3212_p5 = pneg %p3211_p3 }
 0x3d2   : > { %p3219_p9 = pnand %p3218_p7, %p3212_p5 }
 0x432   : > { %v2073_v6 = vpop.xlane.xlu0 %2072 }
 0x433   : > { %v2083_v7 = vsub.f32 %v1848_v56, %v2073_v6 }
 0x435   : > { %v2087_v8 = vmul.f32 1.442695, %v2083_v7 }
 0x436   : > { %v2076_v9 = vpop.xlane.xlu1 %2075 }
 0x437   : > { %3061 = vpow2.f32 %v2087_v8  ;;  %v2084_v10 = vsub.f32 %v1921_v59, %v2076_v9 }
 0x439   : > { %v2089_v11 = vmul.f32 1.442695, %v2084_v10 }
 0x43a   : > { %v2079_v12 = vpop.xlane.xlu1 %2078 }
 0x43b   : > { %3063 = vpow2.f32 %v2089_v11  ;;  %v2085_v13 = vsub.f32 %v1994_v16, %v2079_v12 }
 0x43d   : > { %v2091_v14 = vmul.f32 1.442695, %v2085_v13 }
 0x43e   : > { %v1392_v15 = vpop.permute.xlu1 %1391  ;;  %v2082_v17 = vpop.xlane.xlu0 %2081 }
 0x43f   : > { %3065 = vpow2.f32 %v2091_v14  ;;  %v2086_v18 = vsub.f32 %v2067_v1, %v2082_v17 }
 0x441   : > { %v2093_v19 = vmul.f32 1.442695, %v2086_v18 }
 0x442   : > { %v1398_v20 = vpop.permute.xlu1 %1397  ;;  %v1395_v21 = vpop.permute.xlu0 %1394 }
 0x443   : > { %3067 = vpow2.f32 %v2093_v19  ;;  %v1416_v22 = vcombine.low %v1392_v15, %v1398_v20  ;;  %v1417_v23 = vcombine.high %v1392_v15, %v1398_v20  ;;  %v1400_v24 = vcombine.low %v588_v4, %v1395_v21 }
 0x444   : > { %v3678_v25 = vpop.eup %3061  ;;  %v1401_v26 = vcombine.high %v588_v4, %v1395_v21  ;;  %v2567_v21 = vld [vmem:[#allocation12 + $0x18] sm:$0xff] }
 0x445   : > { %v1424_v28 = vrot.slane %v1416_v22, %v3574_v27  ;;  %v1431_v29 = vrot.slane %v1417_v23, %v3574_v27  ;;  %v1408_v30 = vrot.slane %v1400_v24, %v3574_v27  ;;  %v2095_v31 = vsel %vm1385_vm2, %v3678_v25, 0.0 }
 0x446   : > { %v1415_v32 = vrot.slane %v1401_v26, %v3574_v27  ;;  %2096 = vadd.xlane.f32.xlu1 %v2095_v31 }
 0x447   : > { %v1432_v33 = vcombine.low %v1408_v30, %v1424_v28  ;;  %v1433_v34 = vcombine.high %v1408_v30, %v1424_v28 }
 0x448   : > { %v3064_v35 = vpop.eup %3063  ;;  %v1448_v36 = vcombine.low %v1415_v32, %v1431_v29  ;;  %v1449_v38 = vcombine.high %v1415_v32, %v1431_v29 }
 0x449   : > { %v1440_v39 = vrot.slane %v1432_v33, %v3579_v37  ;;  %v1447_v40 = vrot.slane %v1433_v34, %v3579_v37  ;;  %v2098_v41 = vsel %vm1385_vm2, %v3064_v35, 0.0 }
 0x44a   : > { %v1456_v42 = vrot.slane %v1448_v36, %v3579_v37  ;;  %v1463_v43 = vrot.slane %v1449_v38, %v3579_v37  ;;  %2099 = vadd.xlane.f32.xlu0 %v2098_v41 }
 0x44b   : > { %v1468_v44 = vcombine.low %v1440_v39, %v1447_v40  ;;  %v2804_v45 = vcombine.high %v1440_v39, %v1447_v40 }
 0x44c   : > { %v3066_v46 = vpop.eup %3065  ;;  %v1484_v47 = vcombine.low %v1456_v42, %v1463_v43  ;;  %v2805_v48 = vcombine.high %v1456_v42, %v1463_v43 }
 0x44d   : > { %v1475_v49 = vrot.slane %v1468_v44, %v3574_v27  ;;  %v1483_v50 = vrot.slane %v2804_v45, %v3574_v27  ;;  %v2101_v52 = vsel %vm1385_vm2, %v3066_v46, 0.0  ;;  %v2566_v44 = vld [vmem:[#allocation12 + $0x10] sm:$0xff]  ;;  %v2565_v45 = vld [vmem:[#allocation12 + $0x8] sm:$0xff] }
 0x44e   : > { %v1491_v53 = vrot.slane %v1484_v47, %v3574_v27  ;;  %v1499_v54 = vrot.slane %v2805_v48, %v3574_v27  ;;  %2102 = vadd.xlane.f32.xlu1 %v2101_v52 }
 0x44f   : > { %v1500_v5 = vcombine.low %v1475_v49, %v1483_v50  ;;  %v1501_v55 = vcombine.high %v1475_v49, %v1483_v50 }
 0x450   : > { %v3068_v56 = vpop.eup %3067  ;;  %v1516_v57 = vcombine.low %v1491_v53, %v1499_v54  ;;  %v1517_v58 = vcombine.high %v1491_v53, %v1499_v54 }
 0x451   : > { %v1508_v59 = vrot.slane %v1500_v5, %v3579_v37  ;;  %v1515_v60 = vrot.slane %v1501_v55, %v3579_v37  ;;  %v2104_v61 = vsel %vm1385_vm2, %v3068_v56, 0.0  ;;  %v2564_v5 = vld [vmem:[#allocation12] sm:$0xff] }
 0x452   : > { %v1524_v16 = vrot.slane %v1516_v57, %v3579_v37  ;;  %v1531_v62 = vrot.slane %v1517_v58, %v3579_v37  ;;  %2105 = vadd.xlane.f32.xlu0 %v2104_v61 }
 0x454   : > { %v1532_v63 = vcombine.low %v1508_v59, %v1524_v16  ;;  %v1533_v1 = vcombine.high %v1508_v59, %v1524_v16  ;;  %v1534_v51 = vcombine.low %v1515_v60, %v1531_v62  ;;  %v1535_v2 = vcombine.high %v1515_v60, %v1531_v62 }
 0x456   : > { %1536 = vst.msk [vmem:[#allocation3] sm:$0xff] %vm1385_vm2, %v1532_v63  ;;  %1537 = vst.msk [vmem:[#allocation3 + $0x8] sm:$0xff] %vm1385_vm2, %v1533_v1 }
 0x457   : > { %1538 = vst.msk [vmem:[#allocation3 + $0x10] sm:$0xff] %vm1385_vm2, %v1534_v51  ;;  %1539 = vst.msk [vmem:[#allocation3 + $0x18] sm:$0xff] %vm1385_vm2, %v1535_v2 }
 0x45d   : > { %v2115_v3 = vld [vmem:[#allocation3] sm:$0xff]  ;;  %v2116_v4 = vld [vmem:[#allocation3 + $0x8] sm:$0xff] }
 0x45e   : > { %2916 = vmatpush3.msra.mxu0 %v2115_v3  ;;  %2921 = vmatpush3.msra.mxu1 %v2116_v4  ;;  %v2117_v12 = vld [vmem:[#allocation3 + $0x10] sm:$0xff]  ;;  %v2118_v15 = vld [vmem:[#allocation3 + $0x18] sm:$0xff] }
 0x45f   : > { %2925 = vmatprep.subr.mxu0 %v3306_v0  ;;  %2930 = vmatprep.subr.mxu1 %v3306_v0 }
 0x4cf   : > { %v2097_v6 = vpop.xlane.xlu1 %2096 }
 0x4d0   : > { %3069 = vrcp.f32 %v2097_v6 }
 0x4d3   : > { %v2100_v7 = vpop.xlane.xlu0 %2099 }
 0x4d4   : > { %3071 = vrcp.f32 %v2100_v7 }
 0x4d7   : > { %v2103_v8 = vpop.xlane.xlu1 %2102 }
 0x4d8   : > { %3073 = vrcp.f32 %v2103_v8 }
 0x4db   : > { %v2106_v9 = vpop.xlane.xlu0 %2105 }
 0x4dc   : > { %3075 = vrcp.f32 %v2106_v9 }
 0x4dd   : > { %v3070_v10 = vpop.eup %3069 }
 0x4de   : > { %v2111_v11 = vmul.f32 %v3070_v10, %v3678_v25  ;;  %v2820_v10 = vld [vmem:[%s3800_s8] ss:$0 sm:$0xff] }
 0x4e0   : > { %2918 = vmatmul.mubr.msk.f32.vlgmr.msra.gmra.mxu0 %vm1385_vm2, %v2111_v11 }
 0x4e1   : > { %v3072_v13 = vpop.eup %3071  ;;  %2926 = vmatpush3.msra.mxu0 %v2117_v12  ;;  %2927 = vmatprep.mubr.msk.f32.mxu0 %vm3307_vm0, %v3306_v0 }
 0x4e2   : > { %v2112_v14 = vmul.f32 %v3072_v13, %v3064_v35  ;;  %2935 = vmatprep.subr.mxu0 %v3306_v0 }
 0x4e4   : > { %2923 = vmatmul.mubr.msk.f32.vlgmr.msra.gmra.mxu1 %vm1385_vm2, %v2112_v14 }
 0x4e5   : > { %v3074_v17 = vpop.eup %3073  ;;  %2931 = vmatpush3.msra.mxu1 %v2118_v15  ;;  %2932 = vmatprep.mubr.msk.f32.mxu1 %vm3307_vm0, %v3306_v0 }
 0x4e6   : > { %v2113_v18 = vmul.f32 %v3074_v17, %v3066_v46 }
 0x4e8   : > { %2928 = vmatmul.mubr.msk.f32.vlgmr.msra.gmra.mxu0 %vm1385_vm2, %v2113_v18 }
 0x4e9   : > { %v3076_v19 = vpop.eup %3075  ;;  %2943 = vmatprep.mubr.msk.f32.mxu0 %vm3307_vm0, %v3306_v0  ;;  %2936 = vmatpush3.msra.mxu0 %v2567_v21 }
 0x4ea   : > { %v2114_v20 = vmul.f32 %v3076_v19, %v3068_v56  ;;  %2937 = vmatprep.subr.mxu0 %v3306_v0 }
 0x4eb   : > { %2938 = vmatpush3.msra.mxu0 %v2566_v44 }
 0x4ec   : > { %2933 = vmatmul.mubr.msk.f32.vlgmr.msra.gmra.mxu1 %vm1385_vm2, %v2114_v20  ;;  %2939 = vmatprep.subr.mxu0 %v3306_v0 }
 0x4ed   : > { %2940 = vmatpush3.msra.mxu0 %v2565_v45 }
 0x4ee   : > { %2941 = vmatprep.subr.mxu0 %v3306_v0 }
 0x4ef   : > { %2942 = vmatpush3.msra.mxu0 %v2564_v5 }
 0x5a0   : > { %v2188_v22 = vpop.f32.mrf.mxu0 }
 0x5a2   : > { %v2919_v23 = vpop.f32.mrf.mxu0 }
 0x5a4   : > { %v2261_v24 = vpop.f32.mrf.mxu1 }
 0x5a6   : > { %v2924_v25 = vpop.f32.mrf.mxu1 }
 0x5a8   : > { %v2334_v26 = vpop.f32.mrf.mxu0 }
 0x5a9   : > { %v2411_v29 = vcombine.low %v2188_v22, %v2334_v26  ;;  %v2412_v30 = vcombine.high %v2188_v22, %v2334_v26 }
 0x5aa   : > { %v2929_v28 = vpop.f32.mrf.mxu0 }
 0x5ab   : > { %v2419_v35 = vrot.slane %v2411_v29, %v3574_v27  ;;  %v2426_v36 = vrot.slane %v2412_v30, %v3574_v27 }
 0x5ac   : > { %v2407_v31 = vpop.f32.mrf.mxu1 }
 0x5ad   : > { %v2427_v32 = vcombine.low %v2261_v24, %v2407_v31  ;;  %v2428_v33 = vcombine.high %v2261_v24, %v2407_v31 }
 0x5ae   : > { %v2934_v34 = vpop.f32.mrf.mxu1 }
 0x5af   : > { %v2435_v38 = vrot.slane %v2427_v32, %v3574_v27  ;;  %v2442_v39 = vrot.slane %v2428_v33, %v3574_v27 }
 0x5b1   : > { %v2443_v40 = vcombine.low %v2419_v35, %v2435_v38  ;;  %v2444_v41 = vcombine.high %v2419_v35, %v2435_v38  ;;  %v2459_v42 = vcombine.low %v2426_v36, %v2442_v39  ;;  %v2460_v43 = vcombine.high %v2426_v36, %v2442_v39 }
 0x5b3   : > { %v2451_v46 = vrot.slane %v2443_v40, %v3579_v37  ;;  %v2458_v47 = vrot.slane %v2444_v41, %v3579_v37  ;;  %v2467_v48 = vrot.slane %v2459_v42, %v3579_v37  ;;  %v2474_v49 = vrot.slane %v2460_v43, %v3579_v37 }
 0x5b5   : > { %v2479_v50 = vcombine.low %v2451_v46, %v2458_v47  ;;  %v2818_v52 = vcombine.high %v2451_v46, %v2458_v47  ;;  %v2495_v53 = vcombine.low %v2467_v48, %v2474_v49  ;;  %v2819_v54 = vcombine.high %v2467_v48, %v2474_v49 }
 0x5b7   : > { %v2486_v55 = vrot.slane %v2479_v50, %v3574_v27  ;;  %v2494_v56 = vrot.slane %v2818_v52, %v3574_v27  ;;  %v2502_v57 = vrot.slane %v2495_v53, %v3574_v27  ;;  %v2510_v58 = vrot.slane %v2819_v54, %v3574_v27 }
 0x5b9   : > { %v2512_v59 = vcombine.high %v2486_v55, %v2494_v56  ;;  %v2528_v60 = vcombine.high %v2502_v57, %v2510_v58  ;;  %v2511_v61 = vcombine.low %v2486_v55, %v2494_v56  ;;  %v2527_v16 = vcombine.low %v2502_v57, %v2510_v58 }
 0x5bb   : > { %v2526_v62 = vrot.slane %v2512_v59, %v3579_v37  ;;  %v2542_v63 = vrot.slane %v2528_v60, %v3579_v37  ;;  %v2519_v0 = vrot.slane %v2511_v61, %v3579_v37  ;;  %v2535_v1 = vrot.slane %v2527_v16, %v3579_v37 }
 0x5bd   : > { %v2545_v51 = vcombine.low %v2526_v62, %v2542_v63  ;;  %v2544_v2 = vcombine.high %v2519_v0, %v2535_v1  ;;  %v2543_v3 = vcombine.low %v2519_v0, %v2535_v1  ;;  %v2546_v27 = vcombine.high %v2526_v62, %v2542_v63 }
 0x5bf   : > { %2552 = vrot.lane.b32.xlu1 %v2545_v51, %s3313_s26  ;;  %2548 = vrot.lane.b32.xlu0 %v2544_v2, %s3314_s20 }
 0x5c3   : > { %2556 = vrot.lane.b32.xlu1 %v2546_v27, %s3315_s19 }
 0x631   : > { %v2553_v4 = vpop.permute.xlu1 %2552  ;;  %v2549_v6 = vpop.permute.xlu0 %2548 }
 0x632   : > { %v2559_v7 = vsel %vm1385_vm2, %v2543_v3, %v2549_v6 }
 0x633   : > { %v2561_v8 = vsel %vm2560_vm3, %v2559_v7, %v2553_v4 }
 0x635   : > { %v2557_v37 = vpop.permute.xlu1 %2556 }
 0x636   : > { %v2563_v9 = vsel %vm2562_vm4, %v2561_v8, %v2557_v37 }
 0x637   : > { %2944 = vmatmul.mubr.msk.f32.vlgmr.msra.gmra.mxu0 %vm436_vm1, %v2563_v9 }
 0x6f7   : > { %v2644_v11 = vpop.f32.mrf.mxu0 }
 0x6f8   : > { %v2645_v12 = vadd.f32 %v2820_v10, %v2644_v11 }
 0x6f9   : > { %v2945_v13 = vpop.f32.mrf.mxu0 }
 0x6fa   : > { %2648 = vst.msk [vmem:[%s419_s1] sm:$0xff] %vm436_vm1, %v2645_v12 }
 0x6fb   : > { %3222 = shalt.err (!%p3219_p9)
}
 0x6fc   : > { %s3223_s21 = scalar_lea.hbm %s3749_s17, 128  ;;  %s3227_s20 = scalar_lea.hbm %s3801_s9, 256 }
 0x6fd   : > { %p3224_p10 = scmp.ne.s32.totalorder %s3749_s17, %s3223_s21  ;;  %p3228_p13 = scmp.lt.s32.totalorder %s3749_s17, %s3801_s9 }
 0x6fe   : > { %p3229_p4 = scmp.lt.s32.totalorder %s3227_s20, %s3223_s21 }
 0x6ff   : > { %p3225_p12 = pnand %p3224_p10, %p3489_p2 }
 0x700   : > { %p3230_p11 = por %p3229_p4, %p3228_p13 }
 0x701   : > { %p3226_p6 = pneg %p3225_p12 }
 0x703   : > { %p3231_p1 = pnand %p3230_p11, %p3226_p6 }
 0x705   : > { %3234 = shalt.err (!%p3231_p1)
}
 0x706   : > { %2964 = dma.vmem_to_hbm [thread:$0]  (%p3489_p2), %s2665_s3, 128, %s3749_s17, %s2650_s27  }
 0x707 PF: > { %s2676_s25 = sand.u32 1, %s3277_s30   ;;  %p3822_p3 = scmp.ne.s32.totalorder %s3820_s29, 0 }
 0x708   : > { %p3823_p5 = scmp.ge.s32.totalorder %s3297_s14, 2  ;;  %s2677_s13 = scalar_lea.sflag [#allocation6], %s2676_s25 }
 0x70a   : > { %p2984_p0 = pnand %p3823_p5, %p3822_p3 }
 0x70c   : > { %p2985_p8 = pneg %p2984_p0 }
 0x70e   : > { %3272 = dma.done.wait (%p2985_p8), %s2677_s13, 128  }
 0x70f   : > { %3274 = vsyncadd (%p2985_p8), %s2677_s13, 4294967168  ;;  %s27_s14 = sadd.s32 1, %s3297_s14   ;;  %s3824_s12 = sld [smem:[#allocation18_spill]] }
 0x710   : > { %p24_p7 = scmp.ge.s32.totalorder %s27_s14, 4   ;;  %s3825_s13 = sld [smem:[#allocation19_spill]] }
 0x711   : > { %s3826_s30 = smov %s3281_s10  ;;  %s3827_s10 = smov %s3285_s11 }
 0x712   : > { %s3828_s11 = smov %s3494_s22  ;;  %26 = sbr.rel (!%p24_p7) target bundleno = 13 (0xd), region = 122 }
 0x717   :  { %2682 = vsyncpa [#allocation5], 1 }
 0x718   :  { %2684 = vsyncpa [#allocation5 + $0x1], 1 }
 0x719   :  { %2685 = vsyncpa [#allocation8], 1 }
 0x71a   :  { %2686 = vsyncpa [#allocation11], 1 }
 0x71b   :  { %2687 = vsyncpa [#allocation6], 1 }
 0x71c   :  { %2689 = vsyncpa [#allocation6 + $0x1], 1 }

</bundles_post_ra>
